<compile_context>
chip_gen: v7x
topology: tpu7x:2x2x1
jax: 0.10.0
libtpu: 0.0.40
codegen_flags: <defaults>
</compile_context>

<pallas_src>
import functools

import jax
import jax.numpy as jnp
from jax.experimental import pallas as pl
from jax.experimental.pallas import tpu as pltpu


def path_weight_kernel(max_len_ref, x_ref, wih_ref, whh_ref, b_ref, len_ref,
                       out_ref, gx_sc, h_sc, c_sc, *,
                       seq_len, batch, hidden, add_bias):
    """LSTM recurrence over T steps + (h_T + bias).relu().mean(hidden)."""
    T, B, H = seq_len, batch, hidden

    # Hoisted input projection + combined bias: one MXU matmul covering every
    # timestep. Row t*B + b of gx_sc is step t of sequence b (gate order i|f|g|o).
    gx_sc[...] = (jnp.dot(x_ref[...], wih_ref[...],
                          preferred_element_type=jnp.float32) + b_ref[...])

    h_sc[...] = jnp.zeros_like(h_sc)
    c_sc[...] = jnp.zeros_like(c_sc)

    lengths = len_ref[...]            # (B, 1) int32, loaded once
    max_len = max_len_ref[0]          # SMEM scalar: max(lengths)

    # Statically unrolled recurrence; steps past the longest sequence are
    # skipped entirely.
    for t in range(T):
        @pl.when(t < max_len)
        def _step(t=t):
            h_prev = h_sc[...]                                    # (B, H) f32
            c_prev = c_sc[...]                                    # (B, H) f32

            # Only the unavoidable recurrent matmul stays on the serial path.
            z = gx_sc[t * B:(t + 1) * B, :] + jnp.dot(
                h_prev.astype(jnp.bfloat16), whh_ref[...],
                preferred_element_type=jnp.float32)               # (B, 4H) f32

            i_g = jax.nn.sigmoid(z[:, 0 * H:1 * H])
            f_g = jax.nn.sigmoid(z[:, 1 * H:2 * H])
            g_g = jnp.tanh(z[:, 2 * H:3 * H])
            o_g = jax.nn.sigmoid(z[:, 3 * H:4 * H])

            c_new = f_g * c_prev + i_g * g_g
            h_new = o_g * jnp.tanh(c_new)

            # pack_padded_sequence semantics: freeze rows past their length.
            live = t < lengths                                    # (B, 1) bool
            h_sc[...] = jnp.where(live, h_new, h_prev)
            c_sc[...] = jnp.where(live, c_new, c_prev)

    # path_weight = relu(h_T + bias); AvgPool1d(H) == mean over hidden dim.
    act = jnp.maximum(h_sc[...] + add_bias, 0.0)                  # (B, H)
    out_ref[...] = jnp.mean(act, axis=1, keepdims=True)           # (B, 1)


def path_weight_forward(x_bte, lengths, w_ih, w_hh, b_ih, b_hh, *, add_bias=1.0):
    """x_bte: (B, T, E) batch-first, lengths: (B,) int. Returns (B,) f32."""
    B, T, E = x_bte.shape
    H = w_hh.shape[1]                      # w_hh: (4H, H)
    B_pad = max(8, -(-B // 8) * 8)         # round batch up to a sublane multiple

    # Pad batch; padded rows get length 0 so they stay frozen at h = 0.
    x_p = jnp.zeros((B_pad, T, E), jnp.float32).at[:B].set(x_bte.astype(jnp.float32))
    len_p = jnp.zeros((B_pad,), jnp.int32).at[:B].set(lengths.astype(jnp.int32))

    # Time-major, flattened to (T*B_pad, E): row t*B_pad + b is step t of seq b.
    x_flat = jnp.transpose(x_p, (1, 0, 2)).reshape(T * B_pad, E).astype(jnp.bfloat16)
    wih_t = jnp.transpose(w_ih).astype(jnp.bfloat16)               # (E, 4H)
    whh_t = jnp.transpose(w_hh).astype(jnp.bfloat16)               # (H, 4H)
    b = (b_ih + b_hh).astype(jnp.float32).reshape(1, 4 * H)        # (1, 4H)
    len_col = len_p.reshape(B_pad, 1)                              # (B_pad, 1)
    max_len = jnp.max(len_p).reshape(1).astype(jnp.int32)          # (1,) -> SMEM

    kernel = functools.partial(path_weight_kernel, seq_len=T, batch=B_pad,
                               hidden=H, add_bias=float(add_bias))

    out = pl.pallas_call(
        kernel,
        out_shape=jax.ShapeDtypeStruct((B_pad, 1), jnp.float32),
        grid_spec=pltpu.PrefetchScalarGridSpec(
            num_scalar_prefetch=1,                 # max_len -> SMEM
            grid=(1,),
            in_specs=[
                pl.BlockSpec((T * B_pad, E), lambda i, ml: (0, 0)),   # x (bf16)
                pl.BlockSpec((E, 4 * H), lambda i, ml: (0, 0)),       # W_ih^T
                pl.BlockSpec((H, 4 * H), lambda i, ml: (0, 0)),       # W_hh^T
                pl.BlockSpec((1, 4 * H), lambda i, ml: (0, 0)),       # bias
                pl.BlockSpec((B_pad, 1), lambda i, ml: (0, 0)),       # lengths
            ],
            out_specs=pl.BlockSpec((B_pad, 1), lambda i, ml: (0, 0)),
            scratch_shapes=[
                pltpu.VMEM((T * B_pad, 4 * H), jnp.float32),  # hoisted gates_x
                pltpu.VMEM((B_pad, H), jnp.float32),          # h state
                pltpu.VMEM((B_pad, H), jnp.float32),          # c state
            ],
        ),
        compiler_params=pltpu.CompilerParams(
            dimension_semantics=("arbitrary",)),
    )(max_len, x_flat, wih_t, whh_t, b, len_col)

    return out[:B, 0]


def reference_forward(x_bte, lengths, w_ih, w_hh, b_ih, b_hh, add_bias=1.0):
    """Pure-JAX f32 reference mirroring PyTorch LSTM + pack_padded semantics."""
    B, T, _ = x_bte.shape
    H = w_hh.shape[1]
    h = jnp.zeros((B, H), jnp.float32)
    c = jnp.zeros((B, H), jnp.float32)
    for t in range(T):
        x_t = x_bte[:, t, :]
        z = x_t @ w_ih.T + b_ih + h @ w_hh.T + b_hh
        i_g = jax.nn.sigmoid(z[:, :H])
        f_g = jax.nn.sigmoid(z[:, H:2 * H])
        g_g = jnp.tanh(z[:, 2 * H:3 * H])
        o_g = jax.nn.sigmoid(z[:, 3 * H:])
        c_new = f_g * c + i_g * g_g
        h_new = o_g * jnp.tanh(c_new)
        mask = (t < lengths).astype(jnp.float32)[:, None]
        h = mask * h_new + (1.0 - mask) * h
        c = mask * c_new + (1.0 - mask) * c
    act = jnp.maximum(h + add_bias, 0.0)
    return jnp.mean(act, axis=1)


if __name__ == "__main__":
    # Small shapes consistent with the module: batch=2, seq=8, embedding_dim=32,
    # lstm_hiddeen_unit=128 (module default), bias=1.0.
    B, T, E, H = 2, 8, 32, 128
    ADD_BIAS = 1.0

    key = jax.random.PRNGKey(0)
    kx, k1, k2, k3, k4 = jax.random.split(key, 5)

    # Deterministic parameter init (PyTorch LSTM default: U(-1/sqrt(H), 1/sqrt(H))).
    k_scale = 1.0 / jnp.sqrt(jnp.float32(H))
    w_ih = jax.random.uniform(k1, (4 * H, E), jnp.float32, -k_scale, k_scale)
    w_hh = jax.random.uniform(k2, (4 * H, H), jnp.float32, -k_scale, k_scale)
    b_ih = jax.random.uniform(k3, (4 * H,), jnp.float32, -k_scale, k_scale)
    b_hh = jax.random.uniform(k4, (4 * H,), jnp.float32, -k_scale, k_scale)

    x = jax.random.normal(kx, (B, T, E), jnp.float32)          # (B, T, E) batch-first
    lengths = jnp.array([8, 5], dtype=jnp.int32)               # per-sequence lengths

    out = path_weight_forward(x, lengths, w_ih, w_hh, b_ih, b_hh, add_bias=ADD_BIAS)
    out = jax.block_until_ready(out)

    ref = reference_forward(x, lengths, w_ih, w_hh, b_ih, b_hh, add_bias=ADD_BIAS)
    ref = jax.block_until_ready(ref)

    assert out.shape == (B,), f"expected shape ({B},), got {out.shape}"
    assert jnp.allclose(out, ref, atol=2e-3, rtol=2e-3), (out, ref)

    print("KERNEL_OK")
</pallas_src>

<mosaic_0001>
module attributes {stable_mosaic.version = 11 : i64} {
  func.func @path_weight_kernel(%arg0: i32, %arg1: memref<1xi32, #tpu.memory_space<smem>>, %arg2: memref<64x32xbf16, #tpu.memory_space<vmem>>, %arg3: memref<32x512xbf16, #tpu.memory_space<vmem>>, %arg4: memref<128x512xbf16, #tpu.memory_space<vmem>>, %arg5: memref<1x512xf32, #tpu.memory_space<vmem>>, %arg6: memref<8x1xi32, #tpu.memory_space<vmem>>, %arg7: memref<8x1xf32, #tpu.memory_space<vmem>>, %arg8: memref<64x512xf32, #tpu.memory_space<vmem>>, %arg9: memref<8x128xf32, #tpu.memory_space<vmem>>, %arg10: memref<8x128xf32, #tpu.memory_space<vmem>>) attributes {dimension_semantics = [#tpu.dimension_semantics<arbitrary>], iteration_bounds = array<i64: 1>, scalar_prefetch = 1 : i64, scratch_operands = 3 : i64, tpu.core_type = #tpu.core_type<tc>, window_params = [{pipeline_mode = #tpu.pipeline_mode<synchronous>, transform_indices = @transform_0, window_bounds = array<i64: 64, 32>}, {pipeline_mode = #tpu.pipeline_mode<synchronous>, transform_indices = @transform_1, window_bounds = array<i64: 32, 512>}, {pipeline_mode = #tpu.pipeline_mode<synchronous>, transform_indices = @transform_2, window_bounds = array<i64: 128, 512>}, {pipeline_mode = #tpu.pipeline_mode<synchronous>, transform_indices = @transform_3, window_bounds = array<i64: 1, 512>}, {pipeline_mode = #tpu.pipeline_mode<synchronous>, transform_indices = @transform_4, window_bounds = array<i64: 8, 1>}, {pipeline_mode = #tpu.pipeline_mode<synchronous>, transform_indices = @transform_5, window_bounds = array<i64: 8, 1>}]} {
    %c0 = arith.constant 0 : index
    %c0_0 = arith.constant 0 : index
    %0 = vector.load %arg2[%c0, %c0_0] : memref<64x32xbf16, #tpu.memory_space<vmem>>, vector<64x32xbf16>
    %c0_1 = arith.constant 0 : index
    %c0_2 = arith.constant 0 : index
    %1 = vector.load %arg3[%c0_1, %c0_2] : memref<32x512xbf16, #tpu.memory_space<vmem>>, vector<32x512xbf16>
    %cst = arith.constant dense<0.000000e+00> : vector<64x512xf32>
    %2 = tpu.matmul %0, %1, %cst {dimension_numbers = #tpu.dot_dimension_numbers<[1], [0], [0], [1], [0, 0, 1, 1], [], []>} : vector<64x32xbf16>, vector<32x512xbf16>, vector<64x512xf32> -> vector<64x512xf32>
    %c0_3 = arith.constant 0 : index
    %c0_4 = arith.constant 0 : index
    %3 = vector.load %arg5[%c0_3, %c0_4] : memref<1x512xf32, #tpu.memory_space<vmem>>, vector<1x512xf32>
    %4 = vector.broadcast %3 : vector<1x512xf32> to vector<64x512xf32>
    %5 = arith.addf %2, %4 : vector<64x512xf32>
    %c0_5 = arith.constant 0 : index
    %c0_6 = arith.constant 0 : index
    %6 = vector.load %arg8[%c0_5, %c0_6] : memref<64x512xf32, #tpu.memory_space<vmem>>, vector<64x512xf32>
    tpu.vector_store %arg8[%c0_5, %c0_6], %5 {strides = array<i32>} : memref<64x512xf32, #tpu.memory_space<vmem>>, vector<64x512xf32>,
    %cst_7 = arith.constant 0.000000e+00 : f32
    %7 = vector.broadcast %cst_7 : f32 to vector<8x128xf32>
    %c0_8 = arith.constant 0 : index
    %c0_9 = arith.constant 0 : index
    %8 = vector.load %arg9[%c0_8, %c0_9] : memref<8x128xf32, #tpu.memory_space<vmem>>, vector<8x128xf32>
    tpu.vector_store %arg9[%c0_8, %c0_9], %7 {strides = array<i32>} : memref<8x128xf32, #tpu.memory_space<vmem>>, vector<8x128xf32>,
    %cst_10 = arith.constant 0.000000e+00 : f32
    %9 = vector.broadcast %cst_10 : f32 to vector<8x128xf32>
    %c0_11 = arith.constant 0 : index
    %c0_12 = arith.constant 0 : index
    %10 = vector.load %arg10[%c0_11, %c0_12] : memref<8x128xf32, #tpu.memory_space<vmem>>, vector<8x128xf32>
    tpu.vector_store %arg10[%c0_11, %c0_12], %9 {strides = array<i32>} : memref<8x128xf32, #tpu.memory_space<vmem>>, vector<8x128xf32>,
    %c0_13 = arith.constant 0 : index
    %c0_14 = arith.constant 0 : index
    %11 = vector.load %arg6[%c0_13, %c0_14] : memref<8x1xi32, #tpu.memory_space<vmem>>, vector<8x1xi32>
    %c0_15 = arith.constant 0 : index
    %12 = memref.load %arg1[%c0_15] : memref<1xi32, #tpu.memory_space<smem>>
    %c0_i32 = arith.constant 0 : i32
    %13 = arith.cmpi sgt, %12, %c0_i32 : i32
    %14 = arith.extui %13 : i1 to i32
    %c0_i32_16 = arith.constant 0 : i32
    %15 = arith.cmpi ne, %14, %c0_i32_16 : i32
    scf.if %15 {
      %c0_32 = arith.constant 0 : index
      %c0_33 = arith.constant 0 : index
      %47 = vector.load %arg9[%c0_32, %c0_33] : memref<8x128xf32, #tpu.memory_space<vmem>>, vector<8x128xf32>
      %c0_34 = arith.constant 0 : index
      %c0_35 = arith.constant 0 : index
      %48 = vector.load %arg10[%c0_34, %c0_35] : memref<8x128xf32, #tpu.memory_space<vmem>>, vector<8x128xf32>
      %c0_36 = arith.constant 0 : index
      %c0_37 = arith.constant 0 : index
      %49 = vector.load %arg8[%c0_36, %c0_37] : memref<64x512xf32, #tpu.memory_space<vmem>>, vector<8x512xf32>
      %50 = arith.truncf %47 : vector<8x128xf32> to vector<8x128xbf16>
      %c0_38 = arith.constant 0 : index
      %c0_39 = arith.constant 0 : index
      %51 = vector.load %arg4[%c0_38, %c0_39] : memref<128x512xbf16, #tpu.memory_space<vmem>>, vector<128x512xbf16>
      %cst_40 = arith.constant dense<0.000000e+00> : vector<8x512xf32>
      %52 = tpu.matmul %50, %51, %cst_40 {dimension_numbers = #tpu.dot_dimension_numbers<[1], [0], [0], [1], [0, 0, 1, 1], [], []>} : vector<8x128xbf16>, vector<128x512xbf16>, vector<8x512xf32> -> vector<8x512xf32>
      %53 = arith.addf %49, %52 : vector<8x512xf32>
      %54 = vector.extract_strided_slice %53 {offsets = [0, 0], sizes = [8, 128], strides = [1, 1]} : vector<8x512xf32> to vector<8x128xf32>
      %55 = arith.negf %54 : vector<8x128xf32>
      %56 = math.exp %55 : vector<8x128xf32>
      %cst_41 = arith.constant 1.000000e+00 : f32
      %57 = vector.broadcast %cst_41 : f32 to vector<8x128xf32>
      %58 = arith.addf %57, %56 : vector<8x128xf32>
      %59 = arith.divf %57, %58 : vector<8x128xf32>
      %60 = vector.extract_strided_slice %53 {offsets = [0, 128], sizes = [8, 128], strides = [1, 1]} : vector<8x512xf32> to vector<8x128xf32>
      %61 = arith.negf %60 : vector<8x128xf32>
      %62 = math.exp %61 : vector<8x128xf32>
      %cst_42 = arith.constant 1.000000e+00 : f32
      %63 = vector.broadcast %cst_42 : f32 to vector<8x128xf32>
      %64 = arith.addf %63, %62 : vector<8x128xf32>
      %65 = arith.divf %63, %64 : vector<8x128xf32>
      %66 = vector.extract_strided_slice %53 {offsets = [0, 256], sizes = [8, 128], strides = [1, 1]} : vector<8x512xf32> to vector<8x128xf32>
      %67 = math.tanh %66 : vector<8x128xf32>
      %68 = vector.extract_strided_slice %53 {offsets = [0, 384], sizes = [8, 128], strides = [1, 1]} : vector<8x512xf32> to vector<8x128xf32>
      %69 = arith.negf %68 : vector<8x128xf32>
      %70 = math.exp %69 : vector<8x128xf32>
      %cst_43 = arith.constant 1.000000e+00 : f32
      %71 = vector.broadcast %cst_43 : f32 to vector<8x128xf32>
      %72 = arith.addf %71, %70 : vector<8x128xf32>
      %73 = arith.divf %71, %72 : vector<8x128xf32>
      %74 = arith.mulf %65, %48 : vector<8x128xf32>
      %75 = arith.mulf %59, %67 : vector<8x128xf32>
      %76 = arith.addf %74, %75 : vector<8x128xf32>
      %77 = math.tanh %76 : vector<8x128xf32>
      %78 = arith.mulf %73, %77 : vector<8x128xf32>
      %c0_i32_44 = arith.constant 0 : i32
      %79 = vector.broadcast %c0_i32_44 : i32 to vector<8x1xi32>
      %80 = arith.cmpi sgt, %11, %79 : vector<8x1xi32>
      %81 = vector.shape_cast %80 : vector<8x1xi1> to vector<8x1xi1>
      %82 = vector.broadcast %81 : vector<8x1xi1> to vector<8x128xi1>
      %83 = arith.select %82, %78, %47 : vector<8x128xi1>, vector<8x128xf32>
      %c0_45 = arith.constant 0 : index
      %c0_46 = arith.constant 0 : index
      %84 = vector.load %arg9[%c0_45, %c0_46] : memref<8x128xf32, #tpu.memory_space<vmem>>, vector<8x128xf32>
      tpu.vector_store %arg9[%c0_45, %c0_46], %83 {strides = array<i32>} : memref<8x128xf32, #tpu.memory_space<vmem>>, vector<8x128xf32>,
      %85 = vector.shape_cast %80 : vector<8x1xi1> to vector<8x1xi1>
      %86 = vector.broadcast %85 : vector<8x1xi1> to vector<8x128xi1>
      %87 = arith.select %86, %76, %48 : vector<8x128xi1>, vector<8x128xf32>
      %c0_47 = arith.constant 0 : index
      %c0_48 = arith.constant 0 : index
      %88 = vector.load %arg10[%c0_47, %c0_48] : memref<8x128xf32, #tpu.memory_space<vmem>>, vector<8x128xf32>
      tpu.vector_store %arg10[%c0_47, %c0_48], %87 {strides = array<i32>} : memref<8x128xf32, #tpu.memory_space<vmem>>, vector<8x128xf32>,
    } else {
    }
    %c1_i32 = arith.constant 1 : i32
    %16 = arith.cmpi sgt, %12, %c1_i32 : i32
    %17 = arith.extui %16 : i1 to i32
    %c0_i32_17 = arith.constant 0 : i32
    %18 = arith.cmpi ne, %17, %c0_i32_17 : i32
    scf.if %18 {
      %c0_32 = arith.constant 0 : index
      %c0_33 = arith.constant 0 : index
      %47 = vector.load %arg9[%c0_32, %c0_33] : memref<8x128xf32, #tpu.memory_space<vmem>>, vector<8x128xf32>
      %c0_34 = arith.constant 0 : index
      %c0_35 = arith.constant 0 : index
      %48 = vector.load %arg10[%c0_34, %c0_35] : memref<8x128xf32, #tpu.memory_space<vmem>>, vector<8x128xf32>
      %c8 = arith.constant 8 : index
      %c0_36 = arith.constant 0 : index
      %49 = vector.load %arg8[%c8, %c0_36] : memref<64x512xf32, #tpu.memory_space<vmem>>, vector<8x512xf32>
      %50 = arith.truncf %47 : vector<8x128xf32> to vector<8x128xbf16>
      %c0_37 = arith.constant 0 : index
      %c0_38 = arith.constant 0 : index
      %51 = vector.load %arg4[%c0_37, %c0_38] : memref<128x512xbf16, #tpu.memory_space<vmem>>, vector<128x512xbf16>
      %cst_39 = arith.constant dense<0.000000e+00> : vector<8x512xf32>
      %52 = tpu.matmul %50, %51, %cst_39 {dimension_numbers = #tpu.dot_dimension_numbers<[1], [0], [0], [1], [0, 0, 1, 1], [], []>} : vector<8x128xbf16>, vector<128x512xbf16>, vector<8x512xf32> -> vector<8x512xf32>
      %53 = arith.addf %49, %52 : vector<8x512xf32>
      %54 = vector.extract_strided_slice %53 {offsets = [0, 0], sizes = [8, 128], strides = [1, 1]} : vector<8x512xf32> to vector<8x128xf32>
      %55 = arith.negf %54 : vector<8x128xf32>
      %56 = math.exp %55 : vector<8x128xf32>
      %cst_40 = arith.constant 1.000000e+00 : f32
      %57 = vector.broadcast %cst_40 : f32 to vector<8x128xf32>
      %58 = arith.addf %57, %56 : vector<8x128xf32>
      %59 = arith.divf %57, %58 : vector<8x128xf32>
      %60 = vector.extract_strided_slice %53 {offsets = [0, 128], sizes = [8, 128], strides = [1, 1]} : vector<8x512xf32> to vector<8x128xf32>
      %61 = arith.negf %60 : vector<8x128xf32>
      %62 = math.exp %61 : vector<8x128xf32>
      %cst_41 = arith.constant 1.000000e+00 : f32
      %63 = vector.broadcast %cst_41 : f32 to vector<8x128xf32>
      %64 = arith.addf %63, %62 : vector<8x128xf32>
      %65 = arith.divf %63, %64 : vector<8x128xf32>
      %66 = vector.extract_strided_slice %53 {offsets = [0, 256], sizes = [8, 128], strides = [1, 1]} : vector<8x512xf32> to vector<8x128xf32>
      %67 = math.tanh %66 : vector<8x128xf32>
      %68 = vector.extract_strided_slice %53 {offsets = [0, 384], sizes = [8, 128], strides = [1, 1]} : vector<8x512xf32> to vector<8x128xf32>
      %69 = arith.negf %68 : vector<8x128xf32>
      %70 = math.exp %69 : vector<8x128xf32>
      %cst_42 = arith.constant 1.000000e+00 : f32
      %71 = vector.broadcast %cst_42 : f32 to vector<8x128xf32>
      %72 = arith.addf %71, %70 : vector<8x128xf32>
      %73 = arith.divf %71, %72 : vector<8x128xf32>
      %74 = arith.mulf %65, %48 : vector<8x128xf32>
      %75 = arith.mulf %59, %67 : vector<8x128xf32>
      %76 = arith.addf %74, %75 : vector<8x128xf32>
      %77 = math.tanh %76 : vector<8x128xf32>
      %78 = arith.mulf %73, %77 : vector<8x128xf32>
      %c1_i32_43 = arith.constant 1 : i32
      %79 = vector.broadcast %c1_i32_43 : i32 to vector<8x1xi32>
      %80 = arith.cmpi sgt, %11, %79 : vector<8x1xi32>
      %81 = vector.shape_cast %80 : vector<8x1xi1> to vector<8x1xi1>
      %82 = vector.broadcast %81 : vector<8x1xi1> to vector<8x128xi1>
      %83 = arith.select %82, %78, %47 : vector<8x128xi1>, vector<8x128xf32>
      %c0_44 = arith.constant 0 : index
      %c0_45 = arith.constant 0 : index
      %84 = vector.load %arg9[%c0_44, %c0_45] : memref<8x128xf32, #tpu.memory_space<vmem>>, vector<8x128xf32>
      tpu.vector_store %arg9[%c0_44, %c0_45], %83 {strides = array<i32>} : memref<8x128xf32, #tpu.memory_space<vmem>>, vector<8x128xf32>,
      %85 = vector.shape_cast %80 : vector<8x1xi1> to vector<8x1xi1>
      %86 = vector.broadcast %85 : vector<8x1xi1> to vector<8x128xi1>
      %87 = arith.select %86, %76, %48 : vector<8x128xi1>, vector<8x128xf32>
      %c0_46 = arith.constant 0 : index
      %c0_47 = arith.constant 0 : index
      %88 = vector.load %arg10[%c0_46, %c0_47] : memref<8x128xf32, #tpu.memory_space<vmem>>, vector<8x128xf32>
      tpu.vector_store %arg10[%c0_46, %c0_47], %87 {strides = array<i32>} : memref<8x128xf32, #tpu.memory_space<vmem>>, vector<8x128xf32>,
    } else {
    }
    %c2_i32 = arith.constant 2 : i32
    %19 = arith.cmpi sgt, %12, %c2_i32 : i32
    %20 = arith.extui %19 : i1 to i32
    %c0_i32_18 = arith.constant 0 : i32
    %21 = arith.cmpi ne, %20, %c0_i32_18 : i32
    scf.if %21 {
      %c0_32 = arith.constant 0 : index
      %c0_33 = arith.constant 0 : index
      %47 = vector.load %arg9[%c0_32, %c0_33] : memref<8x128xf32, #tpu.memory_space<vmem>>, vector<8x128xf32>
      %c0_34 = arith.constant 0 : index
      %c0_35 = arith.constant 0 : index
      %48 = vector.load %arg10[%c0_34, %c0_35] : memref<8x128xf32, #tpu.memory_space<vmem>>, vector<8x128xf32>
      %c16 = arith.constant 16 : index
      %c0_36 = arith.constant 0 : index
      %49 = vector.load %arg8[%c16, %c0_36] : memref<64x512xf32, #tpu.memory_space<vmem>>, vector<8x512xf32>
      %50 = arith.truncf %47 : vector<8x128xf32> to vector<8x128xbf16>
      %c0_37 = arith.constant 0 : index
      %c0_38 = arith.constant 0 : index
      %51 = vector.load %arg4[%c0_37, %c0_38] : memref<128x512xbf16, #tpu.memory_space<vmem>>, vector<128x512xbf16>
      %cst_39 = arith.constant dense<0.000000e+00> : vector<8x512xf32>
      %52 = tpu.matmul %50, %51, %cst_39 {dimension_numbers = #tpu.dot_dimension_numbers<[1], [0], [0], [1], [0, 0, 1, 1], [], []>} : vector<8x128xbf16>, vector<128x512xbf16>, vector<8x512xf32> -> vector<8x512xf32>
      %53 = arith.addf %49, %52 : vector<8x512xf32>
      %54 = vector.extract_strided_slice %53 {offsets = [0, 0], sizes = [8, 128], strides = [1, 1]} : vector<8x512xf32> to vector<8x128xf32>
      %55 = arith.negf %54 : vector<8x128xf32>
      %56 = math.exp %55 : vector<8x128xf32>
      %cst_40 = arith.constant 1.000000e+00 : f32
      %57 = vector.broadcast %cst_40 : f32 to vector<8x128xf32>
      %58 = arith.addf %57, %56 : vector<8x128xf32>
      %59 = arith.divf %57, %58 : vector<8x128xf32>
      %60 = vector.extract_strided_slice %53 {offsets = [0, 128], sizes = [8, 128], strides = [1, 1]} : vector<8x512xf32> to vector<8x128xf32>
      %61 = arith.negf %60 : vector<8x128xf32>
      %62 = math.exp %61 : vector<8x128xf32>
      %cst_41 = arith.constant 1.000000e+00 : f32
      %63 = vector.broadcast %cst_41 : f32 to vector<8x128xf32>
      %64 = arith.addf %63, %62 : vector<8x128xf32>
      %65 = arith.divf %63, %64 : vector<8x128xf32>
      %66 = vector.extract_strided_slice %53 {offsets = [0, 256], sizes = [8, 128], strides = [1, 1]} : vector<8x512xf32> to vector<8x128xf32>
      %67 = math.tanh %66 : vector<8x128xf32>
      %68 = vector.extract_strided_slice %53 {offsets = [0, 384], sizes = [8, 128], strides = [1, 1]} : vector<8x512xf32> to vector<8x128xf32>
      %69 = arith.negf %68 : vector<8x128xf32>
      %70 = math.exp %69 : vector<8x128xf32>
      %cst_42 = arith.constant 1.000000e+00 : f32
      %71 = vector.broadcast %cst_42 : f32 to vector<8x128xf32>
      %72 = arith.addf %71, %70 : vector<8x128xf32>
      %73 = arith.divf %71, %72 : vector<8x128xf32>
      %74 = arith.mulf %65, %48 : vector<8x128xf32>
      %75 = arith.mulf %59, %67 : vector<8x128xf32>
      %76 = arith.addf %74, %75 : vector<8x128xf32>
      %77 = math.tanh %76 : vector<8x128xf32>
      %78 = arith.mulf %73, %77 : vector<8x128xf32>
      %c2_i32_43 = arith.constant 2 : i32
      %79 = vector.broadcast %c2_i32_43 : i32 to vector<8x1xi32>
      %80 = arith.cmpi sgt, %11, %79 : vector<8x1xi32>
      %81 = vector.shape_cast %80 : vector<8x1xi1> to vector<8x1xi1>
      %82 = vector.broadcast %81 : vector<8x1xi1> to vector<8x128xi1>
      %83 = arith.select %82, %78, %47 : vector<8x128xi1>, vector<8x128xf32>
      %c0_44 = arith.constant 0 : index
      %c0_45 = arith.constant 0 : index
      %84 = vector.load %arg9[%c0_44, %c0_45] : memref<8x128xf32, #tpu.memory_space<vmem>>, vector<8x128xf32>
      tpu.vector_store %arg9[%c0_44, %c0_45], %83 {strides = array<i32>} : memref<8x128xf32, #tpu.memory_space<vmem>>, vector<8x128xf32>,
      %85 = vector.shape_cast %80 : vector<8x1xi1> to vector<8x1xi1>
      %86 = vector.broadcast %85 : vector<8x1xi1> to vector<8x128xi1>
      %87 = arith.select %86, %76, %48 : vector<8x128xi1>, vector<8x128xf32>
      %c0_46 = arith.constant 0 : index
      %c0_47 = arith.constant 0 : index
      %88 = vector.load %arg10[%c0_46, %c0_47] : memref<8x128xf32, #tpu.memory_space<vmem>>, vector<8x128xf32>
      tpu.vector_store %arg10[%c0_46, %c0_47], %87 {strides = array<i32>} : memref<8x128xf32, #tpu.memory_space<vmem>>, vector<8x128xf32>,
    } else {
    }
    %c3_i32 = arith.constant 3 : i32
    %22 = arith.cmpi sgt, %12, %c3_i32 : i32
    %23 = arith.extui %22 : i1 to i32
    %c0_i32_19 = arith.constant 0 : i32
    %24 = arith.cmpi ne, %23, %c0_i32_19 : i32
    scf.if %24 {
      %c0_32 = arith.constant 0 : index
      %c0_33 = arith.constant 0 : index
      %47 = vector.load %arg9[%c0_32, %c0_33] : memref<8x128xf32, #tpu.memory_space<vmem>>, vector<8x128xf32>
      %c0_34 = arith.constant 0 : index
      %c0_35 = arith.constant 0 : index
      %48 = vector.load %arg10[%c0_34, %c0_35] : memref<8x128xf32, #tpu.memory_space<vmem>>, vector<8x128xf32>
      %c24 = arith.constant 24 : index
      %c0_36 = arith.constant 0 : index
      %49 = vector.load %arg8[%c24, %c0_36] : memref<64x512xf32, #tpu.memory_space<vmem>>, vector<8x512xf32>
      %50 = arith.truncf %47 : vector<8x128xf32> to vector<8x128xbf16>
      %c0_37 = arith.constant 0 : index
      %c0_38 = arith.constant 0 : index
      %51 = vector.load %arg4[%c0_37, %c0_38] : memref<128x512xbf16, #tpu.memory_space<vmem>>, vector<128x512xbf16>
      %cst_39 = arith.constant dense<0.000000e+00> : vector<8x512xf32>
      %52 = tpu.matmul %50, %51, %cst_39 {dimension_numbers = #tpu.dot_dimension_numbers<[1], [0], [0], [1], [0, 0, 1, 1], [], []>} : vector<8x128xbf16>, vector<128x512xbf16>, vector<8x512xf32> -> vector<8x512xf32>
      %53 = arith.addf %49, %52 : vector<8x512xf32>
      %54 = vector.extract_strided_slice %53 {offsets = [0, 0], sizes = [8, 128], strides = [1, 1]} : vector<8x512xf32> to vector<8x128xf32>
      %55 = arith.negf %54 : vector<8x128xf32>
      %56 = math.exp %55 : vector<8x128xf32>
      %cst_40 = arith.constant 1.000000e+00 : f32
      %57 = vector.broadcast %cst_40 : f32 to vector<8x128xf32>
      %58 = arith.addf %57, %56 : vector<8x128xf32>
      %59 = arith.divf %57, %58 : vector<8x128xf32>
      %60 = vector.extract_strided_slice %53 {offsets = [0, 128], sizes = [8, 128], strides = [1, 1]} : vector<8x512xf32> to vector<8x128xf32>
      %61 = arith.negf %60 : vector<8x128xf32>
      %62 = math.exp %61 : vector<8x128xf32>
      %cst_41 = arith.constant 1.000000e+00 : f32
      %63 = vector.broadcast %cst_41 : f32 to vector<8x128xf32>
      %64 = arith.addf %63, %62 : vector<8x128xf32>
      %65 = arith.divf %63, %64 : vector<8x128xf32>
      %66 = vector.extract_strided_slice %53 {offsets = [0, 256], sizes = [8, 128], strides = [1, 1]} : vector<8x512xf32> to vector<8x128xf32>
      %67 = math.tanh %66 : vector<8x128xf32>
      %68 = vector.extract_strided_slice %53 {offsets = [0, 384], sizes = [8, 128], strides = [1, 1]} : vector<8x512xf32> to vector<8x128xf32>
      %69 = arith.negf %68 : vector<8x128xf32>
      %70 = math.exp %69 : vector<8x128xf32>
      %cst_42 = arith.constant 1.000000e+00 : f32
      %71 = vector.broadcast %cst_42 : f32 to vector<8x128xf32>
      %72 = arith.addf %71, %70 : vector<8x128xf32>
      %73 = arith.divf %71, %72 : vector<8x128xf32>
      %74 = arith.mulf %65, %48 : vector<8x128xf32>
      %75 = arith.mulf %59, %67 : vector<8x128xf32>
      %76 = arith.addf %74, %75 : vector<8x128xf32>
      %77 = math.tanh %76 : vector<8x128xf32>
      %78 = arith.mulf %73, %77 : vector<8x128xf32>
      %c3_i32_43 = arith.constant 3 : i32
      %79 = vector.broadcast %c3_i32_43 : i32 to vector<8x1xi32>
      %80 = arith.cmpi sgt, %11, %79 : vector<8x1xi32>
      %81 = vector.shape_cast %80 : vector<8x1xi1> to vector<8x1xi1>
      %82 = vector.broadcast %81 : vector<8x1xi1> to vector<8x128xi1>
      %83 = arith.select %82, %78, %47 : vector<8x128xi1>, vector<8x128xf32>
      %c0_44 = arith.constant 0 : index
      %c0_45 = arith.constant 0 : index
      %84 = vector.load %arg9[%c0_44, %c0_45] : memref<8x128xf32, #tpu.memory_space<vmem>>, vector<8x128xf32>
      tpu.vector_store %arg9[%c0_44, %c0_45], %83 {strides = array<i32>} : memref<8x128xf32, #tpu.memory_space<vmem>>, vector<8x128xf32>,
      %85 = vector.shape_cast %80 : vector<8x1xi1> to vector<8x1xi1>
      %86 = vector.broadcast %85 : vector<8x1xi1> to vector<8x128xi1>
      %87 = arith.select %86, %76, %48 : vector<8x128xi1>, vector<8x128xf32>
      %c0_46 = arith.constant 0 : index
      %c0_47 = arith.constant 0 : index
      %88 = vector.load %arg10[%c0_46, %c0_47] : memref<8x128xf32, #tpu.memory_space<vmem>>, vector<8x128xf32>
      tpu.vector_store %arg10[%c0_46, %c0_47], %87 {strides = array<i32>} : memref<8x128xf32, #tpu.memory_space<vmem>>, vector<8x128xf32>,
    } else {
    }
    %c4_i32 = arith.constant 4 : i32
    %25 = arith.cmpi sgt, %12, %c4_i32 : i32
    %26 = arith.extui %25 : i1 to i32
    %c0_i32_20 = arith.constant 0 : i32
    %27 = arith.cmpi ne, %26, %c0_i32_20 : i32
    scf.if %27 {
      %c0_32 = arith.constant 0 : index
      %c0_33 = arith.constant 0 : index
      %47 = vector.load %arg9[%c0_32, %c0_33] : memref<8x128xf32, #tpu.memory_space<vmem>>, vector<8x128xf32>
      %c0_34 = arith.constant 0 : index
      %c0_35 = arith.constant 0 : index
      %48 = vector.load %arg10[%c0_34, %c0_35] : memref<8x128xf32, #tpu.memory_space<vmem>>, vector<8x128xf32>
      %c32 = arith.constant 32 : index
      %c0_36 = arith.constant 0 : index
      %49 = vector.load %arg8[%c32, %c0_36] : memref<64x512xf32, #tpu.memory_space<vmem>>, vector<8x512xf32>
      %50 = arith.truncf %47 : vector<8x128xf32> to vector<8x128xbf16>
      %c0_37 = arith.constant 0 : index
      %c0_38 = arith.constant 0 : index
      %51 = vector.load %arg4[%c0_37, %c0_38] : memref<128x512xbf16, #tpu.memory_space<vmem>>, vector<128x512xbf16>
      %cst_39 = arith.constant dense<0.000000e+00> : vector<8x512xf32>
      %52 = tpu.matmul %50, %51, %cst_39 {dimension_numbers = #tpu.dot_dimension_numbers<[1], [0], [0], [1], [0, 0, 1, 1], [], []>} : vector<8x128xbf16>, vector<128x512xbf16>, vector<8x512xf32> -> vector<8x512xf32>
      %53 = arith.addf %49, %52 : vector<8x512xf32>
      %54 = vector.extract_strided_slice %53 {offsets = [0, 0], sizes = [8, 128], strides = [1, 1]} : vector<8x512xf32> to vector<8x128xf32>
      %55 = arith.negf %54 : vector<8x128xf32>
      %56 = math.exp %55 : vector<8x128xf32>
      %cst_40 = arith.constant 1.000000e+00 : f32
      %57 = vector.broadcast %cst_40 : f32 to vector<8x128xf32>
      %58 = arith.addf %57, %56 : vector<8x128xf32>
      %59 = arith.divf %57, %58 : vector<8x128xf32>
      %60 = vector.extract_strided_slice %53 {offsets = [0, 128], sizes = [8, 128], strides = [1, 1]} : vector<8x512xf32> to vector<8x128xf32>
      %61 = arith.negf %60 : vector<8x128xf32>
      %62 = math.exp %61 : vector<8x128xf32>
      %cst_41 = arith.constant 1.000000e+00 : f32
      %63 = vector.broadcast %cst_41 : f32 to vector<8x128xf32>
      %64 = arith.addf %63, %62 : vector<8x128xf32>
      %65 = arith.divf %63, %64 : vector<8x128xf32>
      %66 = vector.extract_strided_slice %53 {offsets = [0, 256], sizes = [8, 128], strides = [1, 1]} : vector<8x512xf32> to vector<8x128xf32>
      %67 = math.tanh %66 : vector<8x128xf32>
      %68 = vector.extract_strided_slice %53 {offsets = [0, 384], sizes = [8, 128], strides = [1, 1]} : vector<8x512xf32> to vector<8x128xf32>
      %69 = arith.negf %68 : vector<8x128xf32>
      %70 = math.exp %69 : vector<8x128xf32>
      %cst_42 = arith.constant 1.000000e+00 : f32
      %71 = vector.broadcast %cst_42 : f32 to vector<8x128xf32>
      %72 = arith.addf %71, %70 : vector<8x128xf32>
      %73 = arith.divf %71, %72 : vector<8x128xf32>
      %74 = arith.mulf %65, %48 : vector<8x128xf32>
      %75 = arith.mulf %59, %67 : vector<8x128xf32>
      %76 = arith.addf %74, %75 : vector<8x128xf32>
      %77 = math.tanh %76 : vector<8x128xf32>
      %78 = arith.mulf %73, %77 : vector<8x128xf32>
      %c4_i32_43 = arith.constant 4 : i32
      %79 = vector.broadcast %c4_i32_43 : i32 to vector<8x1xi32>
      %80 = arith.cmpi sgt, %11, %79 : vector<8x1xi32>
      %81 = vector.shape_cast %80 : vector<8x1xi1> to vector<8x1xi1>
      %82 = vector.broadcast %81 : vector<8x1xi1> to vector<8x128xi1>
      %83 = arith.select %82, %78, %47 : vector<8x128xi1>, vector<8x128xf32>
      %c0_44 = arith.constant 0 : index
      %c0_45 = arith.constant 0 : index
      %84 = vector.load %arg9[%c0_44, %c0_45] : memref<8x128xf32, #tpu.memory_space<vmem>>, vector<8x128xf32>
      tpu.vector_store %arg9[%c0_44, %c0_45], %83 {strides = array<i32>} : memref<8x128xf32, #tpu.memory_space<vmem>>, vector<8x128xf32>,
      %85 = vector.shape_cast %80 : vector<8x1xi1> to vector<8x1xi1>
      %86 = vector.broadcast %85 : vector<8x1xi1> to vector<8x128xi1>
      %87 = arith.select %86, %76, %48 : vector<8x128xi1>, vector<8x128xf32>
      %c0_46 = arith.constant 0 : index
      %c0_47 = arith.constant 0 : index
      %88 = vector.load %arg10[%c0_46, %c0_47] : memref<8x128xf32, #tpu.memory_space<vmem>>, vector<8x128xf32>
      tpu.vector_store %arg10[%c0_46, %c0_47], %87 {strides = array<i32>} : memref<8x128xf32, #tpu.memory_space<vmem>>, vector<8x128xf32>,
    } else {
    }
    %c5_i32 = arith.constant 5 : i32
    %28 = arith.cmpi sgt, %12, %c5_i32 : i32
    %29 = arith.extui %28 : i1 to i32
    %c0_i32_21 = arith.constant 0 : i32
    %30 = arith.cmpi ne, %29, %c0_i32_21 : i32
    scf.if %30 {
      %c0_32 = arith.constant 0 : index
      %c0_33 = arith.constant 0 : index
      %47 = vector.load %arg9[%c0_32, %c0_33] : memref<8x128xf32, #tpu.memory_space<vmem>>, vector<8x128xf32>
      %c0_34 = arith.constant 0 : index
      %c0_35 = arith.constant 0 : index
      %48 = vector.load %arg10[%c0_34, %c0_35] : memref<8x128xf32, #tpu.memory_space<vmem>>, vector<8x128xf32>
      %c40 = arith.constant 40 : index
      %c0_36 = arith.constant 0 : index
      %49 = vector.load %arg8[%c40, %c0_36] : memref<64x512xf32, #tpu.memory_space<vmem>>, vector<8x512xf32>
      %50 = arith.truncf %47 : vector<8x128xf32> to vector<8x128xbf16>
      %c0_37 = arith.constant 0 : index
      %c0_38 = arith.constant 0 : index
      %51 = vector.load %arg4[%c0_37, %c0_38] : memref<128x512xbf16, #tpu.memory_space<vmem>>, vector<128x512xbf16>
      %cst_39 = arith.constant dense<0.000000e+00> : vector<8x512xf32>
      %52 = tpu.matmul %50, %51, %cst_39 {dimension_numbers = #tpu.dot_dimension_numbers<[1], [0], [0], [1], [0, 0, 1, 1], [], []>} : vector<8x128xbf16>, vector<128x512xbf16>, vector<8x512xf32> -> vector<8x512xf32>
      %53 = arith.addf %49, %52 : vector<8x512xf32>
      %54 = vector.extract_strided_slice %53 {offsets = [0, 0], sizes = [8, 128], strides = [1, 1]} : vector<8x512xf32> to vector<8x128xf32>
      %55 = arith.negf %54 : vector<8x128xf32>
      %56 = math.exp %55 : vector<8x128xf32>
      %cst_40 = arith.constant 1.000000e+00 : f32
      %57 = vector.broadcast %cst_40 : f32 to vector<8x128xf32>
      %58 = arith.addf %57, %56 : vector<8x128xf32>
      %59 = arith.divf %57, %58 : vector<8x128xf32>
      %60 = vector.extract_strided_slice %53 {offsets = [0, 128], sizes = [8, 128], strides = [1, 1]} : vector<8x512xf32> to vector<8x128xf32>
      %61 = arith.negf %60 : vector<8x128xf32>
      %62 = math.exp %61 : vector<8x128xf32>
      %cst_41 = arith.constant 1.000000e+00 : f32
      %63 = vector.broadcast %cst_41 : f32 to vector<8x128xf32>
      %64 = arith.addf %63, %62 : vector<8x128xf32>
      %65 = arith.divf %63, %64 : vector<8x128xf32>
      %66 = vector.extract_strided_slice %53 {offsets = [0, 256], sizes = [8, 128], strides = [1, 1]} : vector<8x512xf32> to vector<8x128xf32>
      %67 = math.tanh %66 : vector<8x128xf32>
      %68 = vector.extract_strided_slice %53 {offsets = [0, 384], sizes = [8, 128], strides = [1, 1]} : vector<8x512xf32> to vector<8x128xf32>
      %69 = arith.negf %68 : vector<8x128xf32>
      %70 = math.exp %69 : vector<8x128xf32>
      %cst_42 = arith.constant 1.000000e+00 : f32
      %71 = vector.broadcast %cst_42 : f32 to vector<8x128xf32>
      %72 = arith.addf %71, %70 : vector<8x128xf32>
      %73 = arith.divf %71, %72 : vector<8x128xf32>
      %74 = arith.mulf %65, %48 : vector<8x128xf32>
      %75 = arith.mulf %59, %67 : vector<8x128xf32>
      %76 = arith.addf %74, %75 : vector<8x128xf32>
      %77 = math.tanh %76 : vector<8x128xf32>
      %78 = arith.mulf %73, %77 : vector<8x128xf32>
      %c5_i32_43 = arith.constant 5 : i32
      %79 = vector.broadcast %c5_i32_43 : i32 to vector<8x1xi32>
      %80 = arith.cmpi sgt, %11, %79 : vector<8x1xi32>
      %81 = vector.shape_cast %80 : vector<8x1xi1> to vector<8x1xi1>
      %82 = vector.broadcast %81 : vector<8x1xi1> to vector<8x128xi1>
      %83 = arith.select %82, %78, %47 : vector<8x128xi1>, vector<8x128xf32>
      %c0_44 = arith.constant 0 : index
      %c0_45 = arith.constant 0 : index
      %84 = vector.load %arg9[%c0_44, %c0_45] : memref<8x128xf32, #tpu.memory_space<vmem>>, vector<8x128xf32>
      tpu.vector_store %arg9[%c0_44, %c0_45], %83 {strides = array<i32>} : memref<8x128xf32, #tpu.memory_space<vmem>>, vector<8x128xf32>,
      %85 = vector.shape_cast %80 : vector<8x1xi1> to vector<8x1xi1>
      %86 = vector.broadcast %85 : vector<8x1xi1> to vector<8x128xi1>
      %87 = arith.select %86, %76, %48 : vector<8x128xi1>, vector<8x128xf32>
      %c0_46 = arith.constant 0 : index
      %c0_47 = arith.constant 0 : index
      %88 = vector.load %arg10[%c0_46, %c0_47] : memref<8x128xf32, #tpu.memory_space<vmem>>, vector<8x128xf32>
      tpu.vector_store %arg10[%c0_46, %c0_47], %87 {strides = array<i32>} : memref<8x128xf32, #tpu.memory_space<vmem>>, vector<8x128xf32>,
    } else {
    }
    %c6_i32 = arith.constant 6 : i32
    %31 = arith.cmpi sgt, %12, %c6_i32 : i32
    %32 = arith.extui %31 : i1 to i32
    %c0_i32_22 = arith.constant 0 : i32
    %33 = arith.cmpi ne, %32, %c0_i32_22 : i32
    scf.if %33 {
      %c0_32 = arith.constant 0 : index
      %c0_33 = arith.constant 0 : index
      %47 = vector.load %arg9[%c0_32, %c0_33] : memref<8x128xf32, #tpu.memory_space<vmem>>, vector<8x128xf32>
      %c0_34 = arith.constant 0 : index
      %c0_35 = arith.constant 0 : index
      %48 = vector.load %arg10[%c0_34, %c0_35] : memref<8x128xf32, #tpu.memory_space<vmem>>, vector<8x128xf32>
      %c48 = arith.constant 48 : index
      %c0_36 = arith.constant 0 : index
      %49 = vector.load %arg8[%c48, %c0_36] : memref<64x512xf32, #tpu.memory_space<vmem>>, vector<8x512xf32>
      %50 = arith.truncf %47 : vector<8x128xf32> to vector<8x128xbf16>
      %c0_37 = arith.constant 0 : index
      %c0_38 = arith.constant 0 : index
      %51 = vector.load %arg4[%c0_37, %c0_38] : memref<128x512xbf16, #tpu.memory_space<vmem>>, vector<128x512xbf16>
      %cst_39 = arith.constant dense<0.000000e+00> : vector<8x512xf32>
      %52 = tpu.matmul %50, %51, %cst_39 {dimension_numbers = #tpu.dot_dimension_numbers<[1], [0], [0], [1], [0, 0, 1, 1], [], []>} : vector<8x128xbf16>, vector<128x512xbf16>, vector<8x512xf32> -> vector<8x512xf32>
      %53 = arith.addf %49, %52 : vector<8x512xf32>
      %54 = vector.extract_strided_slice %53 {offsets = [0, 0], sizes = [8, 128], strides = [1, 1]} : vector<8x512xf32> to vector<8x128xf32>
      %55 = arith.negf %54 : vector<8x128xf32>
      %56 = math.exp %55 : vector<8x128xf32>
      %cst_40 = arith.constant 1.000000e+00 : f32
      %57 = vector.broadcast %cst_40 : f32 to vector<8x128xf32>
      %58 = arith.addf %57, %56 : vector<8x128xf32>
      %59 = arith.divf %57, %58 : vector<8x128xf32>
      %60 = vector.extract_strided_slice %53 {offsets = [0, 128], sizes = [8, 128], strides = [1, 1]} : vector<8x512xf32> to vector<8x128xf32>
      %61 = arith.negf %60 : vector<8x128xf32>
      %62 = math.exp %61 : vector<8x128xf32>
      %cst_41 = arith.constant 1.000000e+00 : f32
      %63 = vector.broadcast %cst_41 : f32 to vector<8x128xf32>
      %64 = arith.addf %63, %62 : vector<8x128xf32>
      %65 = arith.divf %63, %64 : vector<8x128xf32>
      %66 = vector.extract_strided_slice %53 {offsets = [0, 256], sizes = [8, 128], strides = [1, 1]} : vector<8x512xf32> to vector<8x128xf32>
      %67 = math.tanh %66 : vector<8x128xf32>
      %68 = vector.extract_strided_slice %53 {offsets = [0, 384], sizes = [8, 128], strides = [1, 1]} : vector<8x512xf32> to vector<8x128xf32>
      %69 = arith.negf %68 : vector<8x128xf32>
      %70 = math.exp %69 : vector<8x128xf32>
      %cst_42 = arith.constant 1.000000e+00 : f32
      %71 = vector.broadcast %cst_42 : f32 to vector<8x128xf32>
      %72 = arith.addf %71, %70 : vector<8x128xf32>
      %73 = arith.divf %71, %72 : vector<8x128xf32>
      %74 = arith.mulf %65, %48 : vector<8x128xf32>
      %75 = arith.mulf %59, %67 : vector<8x128xf32>
      %76 = arith.addf %74, %75 : vector<8x128xf32>
      %77 = math.tanh %76 : vector<8x128xf32>
      %78 = arith.mulf %73, %77 : vector<8x128xf32>
      %c6_i32_43 = arith.constant 6 : i32
      %79 = vector.broadcast %c6_i32_43 : i32 to vector<8x1xi32>
      %80 = arith.cmpi sgt, %11, %79 : vector<8x1xi32>
      %81 = vector.shape_cast %80 : vector<8x1xi1> to vector<8x1xi1>
      %82 = vector.broadcast %81 : vector<8x1xi1> to vector<8x128xi1>
      %83 = arith.select %82, %78, %47 : vector<8x128xi1>, vector<8x128xf32>
      %c0_44 = arith.constant 0 : index
      %c0_45 = arith.constant 0 : index
      %84 = vector.load %arg9[%c0_44, %c0_45] : memref<8x128xf32, #tpu.memory_space<vmem>>, vector<8x128xf32>
      tpu.vector_store %arg9[%c0_44, %c0_45], %83 {strides = array<i32>} : memref<8x128xf32, #tpu.memory_space<vmem>>, vector<8x128xf32>,
      %85 = vector.shape_cast %80 : vector<8x1xi1> to vector<8x1xi1>
      %86 = vector.broadcast %85 : vector<8x1xi1> to vector<8x128xi1>
      %87 = arith.select %86, %76, %48 : vector<8x128xi1>, vector<8x128xf32>
      %c0_46 = arith.constant 0 : index
      %c0_47 = arith.constant 0 : index
      %88 = vector.load %arg10[%c0_46, %c0_47] : memref<8x128xf32, #tpu.memory_space<vmem>>, vector<8x128xf32>
      tpu.vector_store %arg10[%c0_46, %c0_47], %87 {strides = array<i32>} : memref<8x128xf32, #tpu.memory_space<vmem>>, vector<8x128xf32>,
    } else {
    }
    %c7_i32 = arith.constant 7 : i32
    %34 = arith.cmpi sgt, %12, %c7_i32 : i32
    %35 = arith.extui %34 : i1 to i32
    %c0_i32_23 = arith.constant 0 : i32
    %36 = arith.cmpi ne, %35, %c0_i32_23 : i32
    scf.if %36 {
      %c0_32 = arith.constant 0 : index
      %c0_33 = arith.constant 0 : index
      %47 = vector.load %arg9[%c0_32, %c0_33] : memref<8x128xf32, #tpu.memory_space<vmem>>, vector<8x128xf32>
      %c0_34 = arith.constant 0 : index
      %c0_35 = arith.constant 0 : index
      %48 = vector.load %arg10[%c0_34, %c0_35] : memref<8x128xf32, #tpu.memory_space<vmem>>, vector<8x128xf32>
      %c56 = arith.constant 56 : index
      %c0_36 = arith.constant 0 : index
      %49 = vector.load %arg8[%c56, %c0_36] : memref<64x512xf32, #tpu.memory_space<vmem>>, vector<8x512xf32>
      %50 = arith.truncf %47 : vector<8x128xf32> to vector<8x128xbf16>
      %c0_37 = arith.constant 0 : index
      %c0_38 = arith.constant 0 : index
      %51 = vector.load %arg4[%c0_37, %c0_38] : memref<128x512xbf16, #tpu.memory_space<vmem>>, vector<128x512xbf16>
      %cst_39 = arith.constant dense<0.000000e+00> : vector<8x512xf32>
      %52 = tpu.matmul %50, %51, %cst_39 {dimension_numbers = #tpu.dot_dimension_numbers<[1], [0], [0], [1], [0, 0, 1, 1], [], []>} : vector<8x128xbf16>, vector<128x512xbf16>, vector<8x512xf32> -> vector<8x512xf32>
      %53 = arith.addf %49, %52 : vector<8x512xf32>
      %54 = vector.extract_strided_slice %53 {offsets = [0, 0], sizes = [8, 128], strides = [1, 1]} : vector<8x512xf32> to vector<8x128xf32>
      %55 = arith.negf %54 : vector<8x128xf32>
      %56 = math.exp %55 : vector<8x128xf32>
      %cst_40 = arith.constant 1.000000e+00 : f32
      %57 = vector.broadcast %cst_40 : f32 to vector<8x128xf32>
      %58 = arith.addf %57, %56 : vector<8x128xf32>
      %59 = arith.divf %57, %58 : vector<8x128xf32>
      %60 = vector.extract_strided_slice %53 {offsets = [0, 128], sizes = [8, 128], strides = [1, 1]} : vector<8x512xf32> to vector<8x128xf32>
      %61 = arith.negf %60 : vector<8x128xf32>
      %62 = math.exp %61 : vector<8x128xf32>
      %cst_41 = arith.constant 1.000000e+00 : f32
      %63 = vector.broadcast %cst_41 : f32 to vector<8x128xf32>
      %64 = arith.addf %63, %62 : vector<8x128xf32>
      %65 = arith.divf %63, %64 : vector<8x128xf32>
      %66 = vector.extract_strided_slice %53 {offsets = [0, 256], sizes = [8, 128], strides = [1, 1]} : vector<8x512xf32> to vector<8x128xf32>
      %67 = math.tanh %66 : vector<8x128xf32>
      %68 = vector.extract_strided_slice %53 {offsets = [0, 384], sizes = [8, 128], strides = [1, 1]} : vector<8x512xf32> to vector<8x128xf32>
      %69 = arith.negf %68 : vector<8x128xf32>
      %70 = math.exp %69 : vector<8x128xf32>
      %cst_42 = arith.constant 1.000000e+00 : f32
      %71 = vector.broadcast %cst_42 : f32 to vector<8x128xf32>
      %72 = arith.addf %71, %70 : vector<8x128xf32>
      %73 = arith.divf %71, %72 : vector<8x128xf32>
      %74 = arith.mulf %65, %48 : vector<8x128xf32>
      %75 = arith.mulf %59, %67 : vector<8x128xf32>
      %76 = arith.addf %74, %75 : vector<8x128xf32>
      %77 = math.tanh %76 : vector<8x128xf32>
      %78 = arith.mulf %73, %77 : vector<8x128xf32>
      %c7_i32_43 = arith.constant 7 : i32
      %79 = vector.broadcast %c7_i32_43 : i32 to vector<8x1xi32>
      %80 = arith.cmpi sgt, %11, %79 : vector<8x1xi32>
      %81 = vector.shape_cast %80 : vector<8x1xi1> to vector<8x1xi1>
      %82 = vector.broadcast %81 : vector<8x1xi1> to vector<8x128xi1>
      %83 = arith.select %82, %78, %47 : vector<8x128xi1>, vector<8x128xf32>
      %c0_44 = arith.constant 0 : index
      %c0_45 = arith.constant 0 : index
      %84 = vector.load %arg9[%c0_44, %c0_45] : memref<8x128xf32, #tpu.memory_space<vmem>>, vector<8x128xf32>
      tpu.vector_store %arg9[%c0_44, %c0_45], %83 {strides = array<i32>} : memref<8x128xf32, #tpu.memory_space<vmem>>, vector<8x128xf32>,
      %85 = vector.shape_cast %80 : vector<8x1xi1> to vector<8x1xi1>
      %86 = vector.broadcast %85 : vector<8x1xi1> to vector<8x128xi1>
      %87 = arith.select %86, %76, %48 : vector<8x128xi1>, vector<8x128xf32>
      %c0_46 = arith.constant 0 : index
      %c0_47 = arith.constant 0 : index
      %88 = vector.load %arg10[%c0_46, %c0_47] : memref<8x128xf32, #tpu.memory_space<vmem>>, vector<8x128xf32>
      tpu.vector_store %arg10[%c0_46, %c0_47], %87 {strides = array<i32>} : memref<8x128xf32, #tpu.memory_space<vmem>>, vector<8x128xf32>,
    } else {
    }
    %c0_24 = arith.constant 0 : index
    %c0_25 = arith.constant 0 : index
    %37 = vector.load %arg9[%c0_24, %c0_25] : memref<8x128xf32, #tpu.memory_space<vmem>>, vector<8x128xf32>
    %cst_26 = arith.constant 1.000000e+00 : f32
    %38 = vector.broadcast %cst_26 : f32 to vector<8x128xf32>
    %39 = arith.addf %37, %38 : vector<8x128xf32>
    %cst_27 = arith.constant 0.000000e+00 : f32
    %40 = vector.broadcast %cst_27 : f32 to vector<8x128xf32>
    %41 = arith.maximumf %39, %40 : vector<8x128xf32>
    %cst_28 = arith.constant dense<0.000000e+00> : vector<8xf32>
    %42 = vector.multi_reduction <add>, %41, %cst_28 [1] : vector<8x128xf32> to vector<8xf32>
    %43 = vector.shape_cast %42 : vector<8xf32> to vector<8x1xf32>
    %cst_29 = arith.constant 1.280000e+02 : f32
    %44 = vector.broadcast %cst_29 : f32 to vector<8x1xf32>
    %45 = arith.divf %43, %44 : vector<8x1xf32>
    %c0_30 = arith.constant 0 : index
    %c0_31 = arith.constant 0 : index
    %46 = vector.load %arg7[%c0_30, %c0_31] : memref<8x1xf32, #tpu.memory_space<vmem>>, vector<8x1xf32>
    tpu.vector_store %arg7[%c0_30, %c0_31], %45 {strides = array<i32>} : memref<8x1xf32, #tpu.memory_space<vmem>>, vector<8x1xf32>,
    return
  }
  func.func @transform_0(%arg0: i32, %arg1: memref<1xi32, #tpu.memory_space<smem>>) -> (i32, i32) {
    %c0_i32 = arith.constant 0 : i32
    %c0_i32_0 = arith.constant 0 : i32
    %c0_i32_1 = arith.constant 0 : i32
    return %c0_i32, %c0_i32_0 : i32, i32
  }
  func.func @transform_1(%arg0: i32, %arg1: memref<1xi32, #tpu.memory_space<smem>>) -> (i32, i32) {
    %c0_i32 = arith.constant 0 : i32
    %c0_i32_0 = arith.constant 0 : i32
    %c0_i32_1 = arith.constant 0 : i32
    return %c0_i32, %c0_i32_0 : i32, i32
  }
  func.func @transform_2(%arg0: i32, %arg1: memref<1xi32, #tpu.memory_space<smem>>) -> (i32, i32) {
    %c0_i32 = arith.constant 0 : i32
    %c0_i32_0 = arith.constant 0 : i32
    %c0_i32_1 = arith.constant 0 : i32
    return %c0_i32, %c0_i32_0 : i32, i32
  }
  func.func @transform_3(%arg0: i32, %arg1: memref<1xi32, #tpu.memory_space<smem>>) -> (i32, i32) {
    %c0_i32 = arith.constant 0 : i32
    %c0_i32_0 = arith.constant 0 : i32
    %c0_i32_1 = arith.constant 0 : i32
    return %c0_i32, %c0_i32_0 : i32, i32
  }
  func.func @transform_4(%arg0: i32, %arg1: memref<1xi32, #tpu.memory_space<smem>>) -> (i32, i32) {
    %c0_i32 = arith.constant 0 : i32
    %c0_i32_0 = arith.constant 0 : i32
    %c0_i32_1 = arith.constant 0 : i32
    return %c0_i32, %c0_i32_0 : i32, i32
  }
  func.func @transform_5(%arg0: i32, %arg1: memref<1xi32, #tpu.memory_space<smem>>) -> (i32, i32) {
    %c0_i32 = arith.constant 0 : i32
    %c0_i32_0 = arith.constant 0 : i32
    %c0_i32_1 = arith.constant 0 : i32
    return %c0_i32, %c0_i32_0 : i32, i32
  }
}

</mosaic_0001>

<bundles_post_ra>
// kernel: tpu_custom_call.1
= control target key start
LH: loop header
LB: loop body
LE: loop exit
PB: predicated region body
PF: predicated region fallthrough
CT: control target
= control target key end

     0   :  { %12 = vsyncpa [#allocation8], 0  ;;  %s3809_s21 = smov [#allocation7]   ;;  %s3996_s0 = inlined_call_operand.<no memory space> [shape: s32[1], index: 0, kind: input, shape index: {}]   ;;  %s3997_s1 = inlined_call_operand.vmem [shape: bf16[64,32], index: 1, kind: input, shape index: {}]   ;;  %s3998_s2 = inlined_call_operand.vmem [shape: bf16[32,512], index: 2, kind: input, shape index: {}]   ;;  %s3999_s3 = inlined_call_operand.hbm [shape: bf16[128,512], index: 3, kind: input, shape index: {}]   ;;  %s4000_s4 = inlined_call_operand.vmem [shape: f32[1,512], index: 4, kind: input, shape index: {}]   ;;  %s4001_s5 = inlined_call_operand.vmem [shape: s32[8,1], index: 5, kind: input, shape index: {}]   ;;  %s4002_s6 = inlined_call_operand.vmem [shape: f32[8,1], index: 6, kind: output, shape index: {}]  }
   0x1   :  { %s22_s22 = sshll.u32 %s3809_s21, 4  ;;  %s3785_s25 = scalar_lea.hbm %s3999_s3, 4096  ;;  %s23_s22 = int_to_ptr.vmem [resolvable:$true] %s22_s22 }
   0x2   :  { %p3786_p0 = scmp.ne.s32.totalorder %s3999_s3, %s3785_s25  ;;  %p3789_p1 = scmp.lt.u32.totalorder %s3785_s25, %s3999_s3 }
   0x4   :  { %p3791_p2 = pnand %p3789_p1, %p3786_p0 }
   0x6   :  { %3794 = shalt.err (!%p3791_p2)
}
   0x7   :  { %s3795_s30 = scalar_lea.vmem %s23_s22, 4096  ;;  %p3800_p4 = scmp.lt.s32.totalorder %s23_s22, %s23_s22 }
   0x8   :  { %p3796_p3 = scmp.ne.s32.totalorder %s23_s22, %s3795_s30  ;;  %p3801_p5 = scmp.lt.s32.totalorder %s3795_s30, %s3795_s30 }
   0xa   :  { %p3802_p6 = por %p3801_p5, %p3800_p4 }
   0xc   :  { %p3803_p7 = pnand %p3802_p6, %p3796_p3 }
   0xe   :  { %3806 = shalt.err (!%p3803_p7)
}
   0xf   :  { %s3810_s7 = smov 256   ;;  %s3811_s8 = smov 16  }
  0x10   :  { %28 = dma.hbm_to_vmem [thread:$0]  %s3999_s3, 4096, %s23_s22, [#allocation8], %s3810_s7, %s3810_s7, %s3811_s8  }
  0x11   :  { %3807 = dma.done.wait [#allocation8], 4096  }
  0x12   :  { %3808 = vsyncadd [#allocation8], 4294963200  ;;  %v3812_v0 = vmov 0.0   ;;  %v3813_v1 = vmov 0   ;;  %v3872_v2 = vld [vmem:[%s4001_s5] sm:$0xff]  ;;  %vm135_vm0 = vcmask 261120   ;;  %v55_v15 = vlaneseq }
  0x13   :  { %326 = vst [vmem:[#allocation3] sm:$0xff] %v3812_v0  ;;  %327 = vst [vmem:[#allocation4] sm:$0xff] %v3812_v0  ;;  %180 = vmatprep.mubr.bf16.mxu0 %v3813_v1  ;;  %253 = vmatprep.mubr.bf16.mxu1 %v3813_v1  ;;  %v3249_v3 = vld [vmem:[%s3998_s2 + $0x4] ss:$16 sps:$4 sm:$0xff]   ;;  %v3251_v4 = vld [vmem:[%s3998_s2 + $0xc] ss:$16 sps:$4 sm:$0xff]  }
  0x14   :  { %v3253_v5 = vld [vmem:[%s3998_s2] ss:$16 sps:$4 sm:$0xff]   ;;  %v3254_v6 = vld [vmem:[%s3998_s2 + $0x8] ss:$16 sps:$4 sm:$0xff]   ;;  %148 = vmatprep.subr.bf16.mxu0 %v3249_v3  ;;  %v3255_v7 = vld [vmem:[%s3998_s2 + $0x24] ss:$16 sps:$4 sm:$0xff]   ;;  %221 = vmatprep.subr.bf16.mxu1 %v3251_v4 }
  0x15   :  { %149 = vmatpush1.bf16.msra.mxu0 %v3253_v5  ;;  %v3257_v8 = vld [vmem:[%s3998_s2 + $0x2c] ss:$16 sps:$4 sm:$0xff]   ;;  %222 = vmatpush1.bf16.msra.mxu1 %v3254_v6  ;;  %v3259_v9 = vld [vmem:[%s3998_s2 + $0x20] ss:$16 sps:$4 sm:$0xff]   ;;  %v3260_v10 = vld [vmem:[%s3998_s2 + $0x28] ss:$16 sps:$4 sm:$0xff]  }
  0x16   :  { %150 = vmatprep.subr.bf16.mxu0 %v3255_v7  ;;  %223 = vmatprep.subr.bf16.mxu1 %v3257_v8  ;;  %v3261_v11 = vld [vmem:[%s3997_s1] sm:$0xff]   ;;  %v3262_v12 = vld [vmem:[%s3997_s1 + $0x8] sm:$0xff]   ;;  %v3263_v13 = vld [vmem:[%s3997_s1 + $0x10] sm:$0xff]   ;;  %v56_v16 = vshrl.u32 %v55_v15, 7  ;;  %p2948_p8 = scmp.le.s32.totalorder %s3996_s0, 0 }
  0x17   :  { %v3264_v14 = vld [vmem:[%s3997_s1 + $0x18] sm:$0xff]   ;;  %v53_v18 = vld [vmem:[%s4000_s4] sm:$0xf]  ;;  %vm643_vm1 = vcmp.gt.s32.totalorder (!%p2948_p8), %v3872_v2, 0 }
  0x18   :  { %v57_v17 = vsub.s32 0, %v56_v16  ;;  %v65_v19 = vsub.s32 2, %v56_v16  ;;  %v61_v20 = vsub.s32 1, %v56_v16  ;;  %v69_v21 = vsub.s32 3, %v56_v16 }
  0x19   :  { %151 = vmatpush1.bf16.msra.mxu0 %v3259_v9  ;;  %224 = vmatpush1.bf16.msra.mxu1 %v3260_v10 }
  0x1a   :  { %v3921_v22 = vrot.slane %v53_v18, %v57_v17  ;;  %v3923_v23 = vrot.slane %v53_v18, %v65_v19  ;;  %v3925_v24 = vrot.slane %v53_v18, %v61_v20  ;;  %v3927_v25 = vrot.slane %v53_v18, %v69_v21 }
  0x1c   :  { %2940 = vmatmul.mubr.msk.bf16.vlgmr.msra.gmra.mrb[0].mxu0 %vm135_vm0, %v3261_v11  ;;  %2944 = vmatmul.mubr.msk.bf16.vlgmr.msra.gmra.mrb[0].mxu1 %vm135_vm0, %v3261_v11 }
  0x1d   :  { %190 = vmatprep.mubr.bf16.mxu0 %v3813_v1  ;;  %263 = vmatprep.mubr.bf16.mxu1 %v3813_v1 }
  0x24   :  { %2941 = vmatmul.mubr.msk.bf16.gmra.mrb[4].mxu0 %vm135_vm0, %v3262_v12  ;;  %2945 = vmatmul.mubr.msk.bf16.gmra.mrb[4].mxu1 %vm135_vm0, %v3262_v12 }
  0x25   :  { %200 = vmatprep.mubr.bf16.mxu0 %v3813_v1  ;;  %273 = vmatprep.mubr.bf16.mxu1 %v3813_v1 }
  0x2c   :  { %2942 = vmatmul.mubr.msk.bf16.gmra.mrb[8].mxu0 %vm135_vm0, %v3263_v13  ;;  %2946 = vmatmul.mubr.msk.bf16.gmra.mrb[8].mxu1 %vm135_vm0, %v3263_v13 }
  0x2d   :  { %210 = vmatprep.mubr.bf16.mxu0 %v3813_v1  ;;  %283 = vmatprep.mubr.bf16.mxu1 %v3813_v1 }
  0x34   :  { %2943 = vmatmul.mubr.msk.bf16.gmra.mrb[12].mxu0 %vm135_vm0, %v3264_v14  ;;  %2947 = vmatmul.mubr.msk.bf16.gmra.mrb[12].mxu1 %vm135_vm0, %v3264_v14 }
  0xef   :  { %v182_v26 = vpop.f32.mrb[0].mxu0  ;;  %v255_v28 = vpop.f32.mrb[0].mxu1 }
  0xf0   :  { %v183_v27 = vadd.f32 %v182_v26, %v3921_v22  ;;  %v184_v29 = vpop.f32.mrb[1].mxu0  ;;  %v256_v30 = vadd.f32 %v255_v28, %v3923_v23  ;;  %v257_v32 = vpop.f32.mrb[1].mxu1 }
  0xf1   :  { %v185_v31 = vadd.f32 %v184_v29, %v3925_v24  ;;  %v186_v33 = vpop.f32.mrb[2].mxu0  ;;  %v258_v34 = vadd.f32 %v257_v32, %v3927_v25  ;;  %v259_v36 = vpop.f32.mrb[2].mxu1  ;;  %v3269_v32 = vld [vmem:[#allocation7 + $0x24] ss:$16 sps:$4 sm:$0xff] (!%p2948_p8)  }
  0xf2   :  { %294 = vst [vmem:[#allocation2] sm:$0xff] %v183_v27  ;;  %v187_v35 = vadd.f32 %v186_v33, %v3921_v22  ;;  %v188_v37 = vpop.f32.mrb[3].mxu0  ;;  %296 = vst [vmem:[#allocation2 + $0x10] sm:$0xff] %v256_v30  ;;  %v260_v38 = vadd.f32 %v259_v36, %v3923_v23  ;;  %v261_v40 = vpop.f32.mrb[3].mxu1  ;;  %v3272_v33 = vld [vmem:[#allocation7 + $0x44] ss:$16 sps:$4 sm:$0xff] (!%p2948_p8)  }
  0xf3   :  { %295 = vst [vmem:[#allocation2 + $0x8] sm:$0xff] %v185_v31  ;;  %v189_v39 = vadd.f32 %v188_v37, %v3925_v24  ;;  %297 = vst [vmem:[#allocation2 + $0x18] sm:$0xff] %v258_v34  ;;  %v262_v41 = vadd.f32 %v261_v40, %v3927_v25  ;;  %v3268_v31 = vld [vmem:[#allocation7] ss:$16 sps:$4 sm:$0xff] (!%p2948_p8)   ;;  %v3277_v34 = vld [vmem:[#allocation7 + $0xc] ss:$16 sps:$4 sm:$0xff] (!%p2948_p8)  }
  0xf4   :  { %298 = vst [vmem:[#allocation2 + $0x20] sm:$0xff] %v187_v35  ;;  %300 = vst [vmem:[#allocation2 + $0x30] sm:$0xff] %v260_v38  ;;  %v3280_v35 = vld [vmem:[#allocation7 + $0x8] ss:$16 sps:$4 sm:$0xff] (!%p2948_p8)   ;;  %v3274_v36 = vld [vmem:[#allocation7 + $0x40] ss:$16 sps:$4 sm:$0xff] (!%p2948_p8)   ;;  %574 = vmatprep.subr.bf16.mxu1 (!%p2948_p8), %v3277_v34 }
  0xf5   :  { %299 = vst [vmem:[#allocation2 + $0x28] sm:$0xff] %v189_v39  ;;  %301 = vst [vmem:[#allocation2 + $0x38] sm:$0xff] %v262_v41  ;;  %v3275_v37 = vld [vmem:[#allocation7 + $0x64] ss:$16 sps:$4 sm:$0xff] (!%p2948_p8)   ;;  %575 = vmatpush1.bf16.msra.mxu1 (!%p2948_p8), %v3280_v35  ;;  %v3283_v38 = vld [vmem:[#allocation7 + $0x2c] ss:$16 sps:$4 sm:$0xff] (!%p2948_p8)  }
  0xf6   :  { %v3286_v39 = vld [vmem:[#allocation7 + $0x28] ss:$16 sps:$4 sm:$0xff] (!%p2948_p8)   ;;  %576 = vmatprep.subr.bf16.mxu1 (!%p2948_p8), %v3283_v38  ;;  %v3279_v40 = vld [vmem:[#allocation7 + $0x60] ss:$16 sps:$4 sm:$0xff] (!%p2948_p8)   ;;  %v3281_v41 = vld [vmem:[#allocation7 + $0x84] ss:$16 sps:$4 sm:$0xff] (!%p2948_p8)  }
  0xf7   :  { %v192_v42 = vpop.f32.mrb[4].mxu0  ;;  %v265_v44 = vpop.f32.mrb[4].mxu1 }
  0xf8   :  { %v193_v43 = vadd.f32 %v192_v42, %v3921_v22  ;;  %v194_v45 = vpop.f32.mrb[5].mxu0  ;;  %v266_v46 = vadd.f32 %v265_v44, %v3923_v23  ;;  %v267_v48 = vpop.f32.mrb[5].mxu1  ;;  %v3289_v42 = vld [vmem:[#allocation7 + $0x4c] ss:$16 sps:$4 sm:$0xff] (!%p2948_p8)  }
  0xf9   :  { %v195_v47 = vadd.f32 %v194_v45, %v3925_v24  ;;  %v196_v49 = vpop.f32.mrb[6].mxu0  ;;  %v268_v50 = vadd.f32 %v267_v48, %v3927_v25  ;;  %v269_v52 = vpop.f32.mrb[6].mxu1  ;;  %577 = vmatpush1.bf16.msra.mxu1 (!%p2948_p8), %v3286_v39  ;;  %v3295_v44 = vld [vmem:[#allocation7 + $0x6c] ss:$16 sps:$4 sm:$0xff] (!%p2948_p8)   ;;  %v3285_v45 = vld [vmem:[#allocation7 + $0x80] ss:$16 sps:$4 sm:$0xff] (!%p2948_p8)  }
  0xfa   :  { %302 = vst [vmem:[#allocation2 + $0x40] sm:$0xff] %v193_v43  ;;  %v197_v51 = vadd.f32 %v196_v49, %v3921_v22  ;;  %v198_v53 = vpop.f32.mrb[7].mxu0  ;;  %304 = vst [vmem:[#allocation2 + $0x50] sm:$0xff] %v266_v46  ;;  %v270_v54 = vadd.f32 %v269_v52, %v3923_v23  ;;  %v271_v56 = vpop.f32.mrb[7].mxu1  ;;  %v3292_v43 = vld [vmem:[#allocation7 + $0x48] ss:$16 sps:$4 sm:$0xff] (!%p2948_p8)   ;;  %578 = vmatprep.subr.bf16.mxu1 (!%p2948_p8), %v3289_v42 }
  0xfb   :  { %303 = vst [vmem:[#allocation2 + $0x48] sm:$0xff] %v195_v47  ;;  %v199_v55 = vadd.f32 %v198_v53, %v3925_v24  ;;  %305 = vst [vmem:[#allocation2 + $0x58] sm:$0xff] %v268_v50  ;;  %v272_v57 = vadd.f32 %v271_v56, %v3927_v25  ;;  %v3287_v46 = vld [vmem:[#allocation7 + $0xa4] ss:$16 sps:$4 sm:$0xff] (!%p2948_p8)   ;;  %v3298_v47 = vld [vmem:[#allocation7 + $0x68] ss:$16 sps:$4 sm:$0xff] (!%p2948_p8)  }
  0xfc   :  { %306 = vst [vmem:[#allocation2 + $0x60] sm:$0xff] %v197_v51  ;;  %308 = vst [vmem:[#allocation2 + $0x70] sm:$0xff] %v270_v54  ;;  %v3301_v48 = vld [vmem:[#allocation7 + $0x8c] ss:$16 sps:$4 sm:$0xff] (!%p2948_p8)   ;;  %v3291_v49 = vld [vmem:[#allocation7 + $0xa0] ss:$16 sps:$4 sm:$0xff] (!%p2948_p8)  }
  0xfd   :  { %307 = vst [vmem:[#allocation2 + $0x68] sm:$0xff] %v199_v55  ;;  %309 = vst [vmem:[#allocation2 + $0x78] sm:$0xff] %v272_v57  ;;  %579 = vmatpush1.bf16.msra.mxu1 (!%p2948_p8), %v3292_v43  ;;  %v3293_v50 = vld [vmem:[#allocation7 + $0xc4] ss:$16 sps:$4 sm:$0xff] (!%p2948_p8)   ;;  %v3304_v51 = vld [vmem:[#allocation7 + $0x88] ss:$16 sps:$4 sm:$0xff] (!%p2948_p8)  }
  0xfe   :  { %580 = vmatprep.subr.bf16.mxu1 (!%p2948_p8), %v3295_v44  ;;  %v3305_v52 = vld [vmem:[#allocation7 + $0xac] ss:$16 sps:$4 sm:$0xff] (!%p2948_p8)   ;;  %v3297_v53 = vld [vmem:[#allocation7 + $0xc0] ss:$16 sps:$4 sm:$0xff] (!%p2948_p8)   ;;  %v3299_v54 = vld [vmem:[#allocation7 + $0xe4] ss:$16 sps:$4 sm:$0xff] (!%p2948_p8)  }
  0xff   :  { %v202_v58 = vpop.f32.mrb[8].mxu0  ;;  %v275_v60 = vpop.f32.mrb[8].mxu1  ;;  %v3307_v55 = vld [vmem:[#allocation7 + $0xa8] ss:$16 sps:$4 sm:$0xff] (!%p2948_p8)   ;;  %v3308_v56 = vld [vmem:[#allocation7 + $0xcc] ss:$16 sps:$4 sm:$0xff] (!%p2948_p8)  }
 0x100   :  { %v203_v59 = vadd.f32 %v202_v58, %v3921_v22  ;;  %v204_v61 = vpop.f32.mrb[9].mxu0  ;;  %v276_v62 = vadd.f32 %v275_v60, %v3923_v23  ;;  %v277_v0 = vpop.f32.mrb[9].mxu1  ;;  %v3303_v57 = vld [vmem:[#allocation7 + $0xe0] ss:$16 sps:$4 sm:$0xff] (!%p2948_p8)   ;;  %v3311_v60 = vld [vmem:[#allocation7 + $0xec] ss:$16 sps:$4 sm:$0xff] (!%p2948_p8)  }
 0x101   :  { %v205_v63 = vadd.f32 %v204_v61, %v3925_v24  ;;  %v206_v1 = vpop.f32.mrb[10].mxu0  ;;  %v278_v3 = vadd.f32 %v277_v0, %v3927_v25  ;;  %v279_v5 = vpop.f32.mrb[10].mxu1  ;;  %581 = vmatpush1.bf16.msra.mxu1 (!%p2948_p8), %v3298_v47  ;;  %v334_v58 = vld [vmem:[#allocation3] sm:$0xff] (!%p2948_p8)  ;;  %v337_v0 = vld [vmem:[#allocation2 + $0x8] sm:$0xff] (!%p2948_p8) }
 0x102   :  { %310 = vst [vmem:[#allocation2 + $0x80] sm:$0xff] %v203_v59  ;;  %v207_v4 = vadd.f32 %v206_v1, %v3921_v22  ;;  %v208_v6 = vpop.f32.mrb[11].mxu0  ;;  %312 = vst [vmem:[#allocation2 + $0x90] sm:$0xff] %v276_v62  ;;  %v280_v7 = vadd.f32 %v279_v5, %v3923_v23  ;;  %v281_v9 = vpop.f32.mrb[11].mxu1  ;;  %582 = vmatprep.subr.bf16.mxu1 (!%p2948_p8), %v3301_v48  ;;  %v3310_v59 = vld [vmem:[#allocation7 + $0xc8] ss:$16 sps:$4 sm:$0xff] (!%p2948_p8)   ;;  %v340_v61 = vpack.c.bf16 (!%p2948_p8), %v334_v58, %v334_v58 }
 0x103   :  { %311 = vst [vmem:[#allocation2 + $0x88] sm:$0xff] %v205_v63  ;;  %v209_v8 = vadd.f32 %v208_v6, %v3925_v24  ;;  %313 = vst [vmem:[#allocation2 + $0x98] sm:$0xff] %v278_v3  ;;  %v282_v10 = vadd.f32 %v281_v9, %v3927_v25  ;;  %v3313_v62 = vld [vmem:[#allocation7 + $0xe8] ss:$16 sps:$4 sm:$0xff] (!%p2948_p8)   ;;  %v336_v63 = vld [vmem:[#allocation2] sm:$0xff] (!%p2948_p8) }
 0x104   :  { %314 = vst [vmem:[#allocation2 + $0xa0] sm:$0xff] %v207_v4  ;;  %316 = vst [vmem:[#allocation2 + $0xb0] sm:$0xff] %v280_v7 }
 0x105   :  { %315 = vst [vmem:[#allocation2 + $0xa8] sm:$0xff] %v209_v8  ;;  %317 = vst [vmem:[#allocation2 + $0xb8] sm:$0xff] %v282_v10  ;;  %583 = vmatpush1.bf16.msra.mxu1 (!%p2948_p8), %v3304_v51  ;;  %v339_v10 = vld [vmem:[#allocation2 + $0x18] sm:$0xff] (!%p2948_p8) }
 0x106   :  { %584 = vmatprep.subr.bf16.mxu1 (!%p2948_p8), %v3305_v52 }
 0x107   :  { %v212_v11 = vpop.f32.mrb[12].mxu0  ;;  %v285_v13 = vpop.f32.mrb[12].mxu1  ;;  %333 = sbr.rel (%p2948_p8) target bundleno = 560 (0x230), region = 29 }
 0x108   :  { %v213_v12 = vadd.f32 %v212_v11, %v3921_v22  ;;  %v214_v14 = vpop.f32.mrb[13].mxu0  ;;  %v286_v15 = vadd.f32 %v285_v13, %v3923_v23  ;;  %v287_v17 = vpop.f32.mrb[13].mxu1 }
 0x109   :  { %v215_v16 = vadd.f32 %v214_v14, %v3925_v24  ;;  %v216_v18 = vpop.f32.mrb[14].mxu0  ;;  %v288_v19 = vadd.f32 %v287_v17, %v3927_v25  ;;  %v289_v21 = vpop.f32.mrb[14].mxu1  ;;  %585 = vmatpush1.bf16.msra.mxu1 (!%p2948_p8), %v3307_v55 }
 0x10a   :  { %318 = vst [vmem:[#allocation2 + $0xc0] sm:$0xff] %v213_v12  ;;  %v217_v20 = vadd.f32 %v216_v18, %v3921_v22  ;;  %v218_v26 = vpop.f32.mrb[15].mxu0  ;;  %320 = vst [vmem:[#allocation2 + $0xd0] sm:$0xff] %v286_v15  ;;  %v290_v27 = vadd.f32 %v289_v21, %v3923_v23  ;;  %v291_v29 = vpop.f32.mrb[15].mxu1  ;;  %v3266_v22 = vld [vmem:[#allocation7 + $0x4] ss:$16 sps:$4 sm:$0xff] (!%p2948_p8)   ;;  %586 = vmatprep.subr.bf16.mxu1 (!%p2948_p8), %v3308_v56 }
 0x10b   :  { %319 = vst [vmem:[#allocation2 + $0xc8] sm:$0xff] %v215_v16  ;;  %v219_v28 = vadd.f32 %v218_v26, %v3925_v24  ;;  %321 = vst [vmem:[#allocation2 + $0xd8] sm:$0xff] %v288_v19  ;;  %v292_v30 = vadd.f32 %v291_v29, %v3927_v25  ;;  %v3814_v23 = vmov (!%p2948_p8), 0   ;;  %533 = vmatprep.subr.bf16.mxu0 (!%p2948_p8), %v3266_v22  ;;  %v3271_v25 = vld [vmem:[#allocation7 + $0x20] ss:$16 sps:$4 sm:$0xff] (!%p2948_p8)   ;;  %v335_v29 = vld [vmem:[#allocation4] sm:$0xff] (!%p2948_p8) }
 0x10c   :  { %322 = vst [vmem:[#allocation2 + $0xe0] sm:$0xff] %v217_v20  ;;  %324 = vst [vmem:[#allocation2 + $0xf0] sm:$0xff] %v290_v27  ;;  %565 = vmatprep.mubr.bf16.mxu0 (!%p2948_p8), %v3814_v23  ;;  %606 = vmatprep.mubr.bf16.mxu1 (!%p2948_p8), %v3814_v23  ;;  %v644_v24 = vsel (!%p2948_p8), %vm643_vm1, 1, %v3814_v23  ;;  %v338_v16 = vld [vmem:[#allocation2 + $0x10] sm:$0xff] (!%p2948_p8) }
 0x10d   :  { %323 = vst [vmem:[#allocation2 + $0xe8] sm:$0xff] %v219_v28  ;;  %325 = vst [vmem:[#allocation2 + $0xf8] sm:$0xff] %v292_v30  ;;  %3265 = vset.pattern.permute.xlu0 (!%p2948_p8), %v3814_v23  ;;  %534 = vmatpush1.bf16.msra.mxu0 (!%p2948_p8), %v3268_v31 }
 0x10e   :  { %646 = vperm.xlu0 %3265, %v644_v24   ;;  %535 = vmatprep.subr.bf16.mxu0 %v3269_v32 }
 0x10f   :  { %587 = vmatpush1.bf16.msra.mxu1 %v3310_v59 }
 0x110   :  { %588 = vmatprep.subr.bf16.mxu1 %v3311_v60 }
 0x111   :  { %536 = vmatpush1.bf16.msra.mxu0 %v3271_v25 }
 0x112   :  { %537 = vmatprep.subr.bf16.mxu0 %v3272_v33 }
 0x113   :  { %589 = vmatpush1.bf16.msra.mxu1 %v3313_v62 }
 0x115   :  { %538 = vmatpush1.bf16.msra.mxu0 %v3274_v36 }
 0x116   :  { %539 = vmatprep.subr.bf16.mxu0 %v3275_v37  ;;  %607 = vmatmul.mubr.bf16.vlgmr.msra.gmra.mrb[0].mxu1 %v340_v61 }
 0x119   :  { %540 = vmatpush1.bf16.msra.mxu0 %v3279_v40 }
 0x11a   :  { %541 = vmatprep.subr.bf16.mxu0 %v3281_v41 }
 0x11d   :  { %542 = vmatpush1.bf16.msra.mxu0 %v3285_v45 }
 0x11e   :  { %543 = vmatprep.subr.bf16.mxu0 %v3287_v46 }
 0x121   :  { %544 = vmatpush1.bf16.msra.mxu0 %v3291_v49 }
 0x122   :  { %545 = vmatprep.subr.bf16.mxu0 %v3293_v50 }
 0x125   :  { %546 = vmatpush1.bf16.msra.mxu0 %v3297_v53 }
 0x126   :  { %547 = vmatprep.subr.bf16.mxu0 %v3299_v54 }
 0x129   :  { %548 = vmatpush1.bf16.msra.mxu0 %v3303_v57 }
 0x12c   :  { %566 = vmatmul.mubr.bf16.vlgmr.msra.gmra.mrb[0].mxu0 %v340_v61 }
 0x18d   :  { %v647_v31 = vpop.permute.xlu0 %646 }
 0x18e   :  { %vm648_vm2 = vcmp.eq.s32.totalorder %v647_v31, 1 }
 0x1e9   :  { %v608_v11 = vpop.f32.mrb[0].mxu1 }
 0x1ea   :  { %v610_v12 = vpop.f32.mrb[1].mxu1  ;;  %v617_v18 = vadd.f32 %v608_v11, %v338_v16 }
 0x1eb   :  { %v618_v13 = vadd.f32 %v610_v12, %v339_v10  ;;  %v612_v14 = vpop.f32.mrb[2].mxu1 }
 0x1ec   :  { %v613_v15 = vpop.f32.mrb[3].mxu1 }
 0x1ed   :  { %v2983_v17 = vmul.f32 -1.442695, %v618_v13 }
 0x1ff   :  { %v567_v1 = vpop.f32.mrb[0].mxu0 }
 0x200   :  { %v615_v3 = vadd.f32 %v567_v1, %v336_v63  ;;  %v569_v4 = vpop.f32.mrb[1].mxu0 }
 0x201   :  { %v616_v5 = vadd.f32 %v569_v4, %v337_v0  ;;  %v571_v6 = vpop.f32.mrb[2].mxu0 }
 0x202   :  { %v2981_v7 = vmul.f32 -1.442695, %v615_v3  ;;  %v572_v8 = vpop.f32.mrb[3].mxu0 }
 0x203   :  { %v2982_v9 = vmul.f32 -1.442695, %v616_v5 }
 0x204   :  { %3314 = vpow2.f32 %v2981_v7 }
 0x205   :  { %3316 = vpow2.f32 %v2982_v9 }
 0x206   :  { %3318 = vpow2.f32 %v2983_v17 }
 0x207   :  { %3320 = vtanh.f32 %v617_v18 }
 0x20e   :  { %v3315_v19 = vpop.eup %3314 }
 0x20f   :  { %v3317_v20 = vpop.eup %3316  ;;  %v622_v21 = vadd.f32 1.0, %v3315_v19 }
 0x210   :  { %v628_v26 = vadd.f32 1.0, %v3317_v20  ;;  %v3319_v27 = vpop.eup %3318 }
 0x211   :  { %3322 = vrcp.f32 %v622_v21  ;;  %v3321_v28 = vpop.eup %3320  ;;  %v635_v22 = vadd.f32 1.0, %v3319_v27 }
 0x212   :  { %3324 = vrcp.f32 %v628_v26 }
 0x213   :  { %3326 = vrcp.f32 %v635_v22 }
 0x21b   :  { %v3323_v30 = vpop.eup %3322 }
 0x21c   :  { %v3325_v23 = vpop.eup %3324  ;;  %v639_v24 = vmul.f32 %v3323_v30, %v3321_v28 }
 0x21d   :  { %v638_v32 = vmul.f32 %v3325_v23, %v335_v29  ;;  %v3327_v34 = vpop.eup %3326 }
 0x21f   :  { %v640_v25 = vadd.f32 %v639_v24, %v638_v32 }
 0x221   :  { %3328 = vtanh.f32 %v640_v25  ;;  %v651_v33 = vsel %vm648_vm2, %v640_v25, %v335_v29 }
 0x222   :  { %652 = vst [vmem:[#allocation4] sm:$0xff] %v651_v33 }
 0x22b   :  { %v3329_v35 = vpop.eup %3328 }
 0x22c   :  { %v642_v36 = vmul.f32 %v3329_v35, %v3327_v34 }
 0x22e   :  { %v649_v37 = vsel %vm648_vm2, %v642_v36, %v334_v58 }
 0x22f   :  { %650 = vst [vmem:[#allocation3] sm:$0xff] %v649_v37 }
 0x230 PF:  { %p2984_p9 = scmp.le.s32.totalorder %s3996_s0, 1 }
 0x231   :  { %v3331_v38 = vld [vmem:[#allocation7 + $0x4] ss:$16 sps:$4 sm:$0xff] (!%p2984_p9)   ;;  %vm966_vm3 = vcmp.gt.s32.totalorder (!%p2984_p9), %v3872_v2, 1  ;;  %v3333_v39 = vld [vmem:[#allocation7] ss:$16 sps:$4 sm:$0xff] (!%p2984_p9)   ;;  %v3815_v40 = vmov (!%p2984_p9), 0  }
 0x232   :  { %656 = sbr.rel (%p2984_p9) target bundleno = 855 (0x357), region = 33  ;;  %888 = vmatprep.mubr.bf16.mxu0 (!%p2984_p9), %v3815_v40  ;;  %929 = vmatprep.mubr.bf16.mxu1 (!%p2984_p9), %v3815_v40  ;;  %v967_v41 = vsel (!%p2984_p9), %vm966_vm3, 1, %v3815_v40  ;;  %v3334_v42 = vld [vmem:[#allocation7 + $0x24] ss:$16 sps:$4 sm:$0xff] (!%p2984_p9)   ;;  %v3336_v43 = vld [vmem:[#allocation7 + $0x20] ss:$16 sps:$4 sm:$0xff] (!%p2984_p9)  }
 0x233   :  { %856 = vmatprep.subr.bf16.mxu0 (!%p2984_p9), %v3331_v38  ;;  %3330 = vset.pattern.permute.xlu0 (!%p2984_p9), %v3815_v40  ;;  %v3337_v44 = vld [vmem:[#allocation7 + $0x44] ss:$16 sps:$4 sm:$0xff] (!%p2984_p9)   ;;  %v3342_v45 = vld [vmem:[#allocation7 + $0xc] ss:$16 sps:$4 sm:$0xff] (!%p2984_p9)   ;;  %v3345_v46 = vld [vmem:[#allocation7 + $0x8] ss:$16 sps:$4 sm:$0xff] (!%p2984_p9)  }
 0x234   :  { %857 = vmatpush1.bf16.msra.mxu0 (!%p2984_p9), %v3333_v39  ;;  %969 = vperm.xlu0 (!%p2984_p9), %3330, %v967_v41   ;;  %v3339_v47 = vld [vmem:[#allocation7 + $0x40] ss:$16 sps:$4 sm:$0xff] (!%p2984_p9)   ;;  %v3340_v48 = vld [vmem:[#allocation7 + $0x64] ss:$16 sps:$4 sm:$0xff] (!%p2984_p9)   ;;  %v3348_v49 = vld [vmem:[#allocation7 + $0x2c] ss:$16 sps:$4 sm:$0xff] (!%p2984_p9)  }
 0x235   :  { %858 = vmatprep.subr.bf16.mxu0 (!%p2984_p9), %v3334_v42  ;;  %897 = vmatprep.subr.bf16.mxu1 (!%p2984_p9), %v3342_v45  ;;  %v3351_v50 = vld [vmem:[#allocation7 + $0x28] ss:$16 sps:$4 sm:$0xff] (!%p2984_p9)   ;;  %v3344_v51 = vld [vmem:[#allocation7 + $0x60] ss:$16 sps:$4 sm:$0xff] (!%p2984_p9)   ;;  %v3346_v52 = vld [vmem:[#allocation7 + $0x84] ss:$16 sps:$4 sm:$0xff] (!%p2984_p9)  }
 0x236   :  { %898 = vmatpush1.bf16.msra.mxu1 (!%p2984_p9), %v3345_v46  ;;  %v3354_v53 = vld [vmem:[#allocation7 + $0x4c] ss:$16 sps:$4 sm:$0xff] (!%p2984_p9)   ;;  %v3357_v54 = vld [vmem:[#allocation7 + $0x48] ss:$16 sps:$4 sm:$0xff] (!%p2984_p9)   ;;  %v3350_v56 = vld [vmem:[#allocation7 + $0x80] ss:$16 sps:$4 sm:$0xff] (!%p2984_p9)  }
 0x237   :  { %899 = vmatprep.subr.bf16.mxu1 (!%p2984_p9), %v3348_v49  ;;  %v3360_v55 = vld [vmem:[#allocation7 + $0x6c] ss:$16 sps:$4 sm:$0xff] (!%p2984_p9)   ;;  %v3352_v57 = vld [vmem:[#allocation7 + $0xa4] ss:$16 sps:$4 sm:$0xff] (!%p2984_p9)   ;;  %v3363_v58 = vld [vmem:[#allocation7 + $0x68] ss:$16 sps:$4 sm:$0xff] (!%p2984_p9)  }
 0x238   :  { %859 = vmatpush1.bf16.msra.mxu0 (!%p2984_p9), %v3336_v43  ;;  %v3366_v59 = vld [vmem:[#allocation7 + $0x8c] ss:$16 sps:$4 sm:$0xff] (!%p2984_p9)   ;;  %v3356_v60 = vld [vmem:[#allocation7 + $0xa0] ss:$16 sps:$4 sm:$0xff] (!%p2984_p9)   ;;  %v3358_v61 = vld [vmem:[#allocation7 + $0xc4] ss:$16 sps:$4 sm:$0xff] (!%p2984_p9)  }
 0x239   :  { %860 = vmatprep.subr.bf16.mxu0 %v3337_v44  ;;  %v3369_v62 = vld [vmem:[#allocation7 + $0x88] ss:$16 sps:$4 sm:$0xff]   ;;  %v3370_v63 = vld [vmem:[#allocation7 + $0xac] ss:$16 sps:$4 sm:$0xff]   ;;  %v3362_v0 = vld [vmem:[#allocation7 + $0xc0] ss:$16 sps:$4 sm:$0xff]  }
 0x23a   :  { %900 = vmatpush1.bf16.msra.mxu1 %v3351_v50  ;;  %v3364_v1 = vld [vmem:[#allocation7 + $0xe4] ss:$16 sps:$4 sm:$0xff]   ;;  %v3372_v3 = vld [vmem:[#allocation7 + $0xa8] ss:$16 sps:$4 sm:$0xff]   ;;  %v3373_v4 = vld [vmem:[#allocation7 + $0xcc] ss:$16 sps:$4 sm:$0xff]  }
 0x23b   :  { %901 = vmatprep.subr.bf16.mxu1 %v3354_v53  ;;  %v3368_v5 = vld [vmem:[#allocation7 + $0xe0] ss:$16 sps:$4 sm:$0xff]   ;;  %v3375_v7 = vld [vmem:[#allocation7 + $0xc8] ss:$16 sps:$4 sm:$0xff]   ;;  %v3376_v8 = vld [vmem:[#allocation7 + $0xec] ss:$16 sps:$4 sm:$0xff]  }
 0x23c   :  { %861 = vmatpush1.bf16.msra.mxu0 %v3339_v47  ;;  %v657_v6 = vld [vmem:[#allocation3] sm:$0xff]  ;;  %v3378_v10 = vld [vmem:[#allocation7 + $0xe8] ss:$16 sps:$4 sm:$0xff]   ;;  %v661_v22 = vld [vmem:[#allocation2 + $0x30] sm:$0xff] }
 0x23d   :  { %862 = vmatprep.subr.bf16.mxu0 %v3340_v48  ;;  %v663_v9 = vpack.c.bf16 %v657_v6, %v657_v6  ;;  %v659_v11 = vld [vmem:[#allocation2 + $0x20] sm:$0xff]  ;;  %v660_v12 = vld [vmem:[#allocation2 + $0x28] sm:$0xff]  ;;  %v662_v21 = vld [vmem:[#allocation2 + $0x38] sm:$0xff] }
 0x23e   :  { %902 = vmatpush1.bf16.msra.mxu1 %v3357_v54  ;;  %v658_v36 = vld [vmem:[#allocation4] sm:$0xff] }
 0x23f   :  { %903 = vmatprep.subr.bf16.mxu1 %v3360_v55 }
 0x240   :  { %863 = vmatpush1.bf16.msra.mxu0 %v3344_v51 }
 0x241   :  { %864 = vmatprep.subr.bf16.mxu0 %v3346_v52 }
 0x242   :  { %904 = vmatpush1.bf16.msra.mxu1 %v3363_v58 }
 0x243   :  { %905 = vmatprep.subr.bf16.mxu1 %v3366_v59 }
 0x244   :  { %865 = vmatpush1.bf16.msra.mxu0 %v3350_v56 }
 0x245   :  { %866 = vmatprep.subr.bf16.mxu0 %v3352_v57 }
 0x246   :  { %906 = vmatpush1.bf16.msra.mxu1 %v3369_v62 }
 0x247   :  { %907 = vmatprep.subr.bf16.mxu1 %v3370_v63 }
 0x248   :  { %867 = vmatpush1.bf16.msra.mxu0 %v3356_v60 }
 0x249   :  { %868 = vmatprep.subr.bf16.mxu0 %v3358_v61 }
 0x24a   :  { %908 = vmatpush1.bf16.msra.mxu1 %v3372_v3 }
 0x24b   :  { %909 = vmatprep.subr.bf16.mxu1 %v3373_v4 }
 0x24c   :  { %869 = vmatpush1.bf16.msra.mxu0 %v3362_v0 }
 0x24d   :  { %870 = vmatprep.subr.bf16.mxu0 %v3364_v1 }
 0x24e   :  { %910 = vmatpush1.bf16.msra.mxu1 %v3375_v7 }
 0x24f   :  { %911 = vmatprep.subr.bf16.mxu1 %v3376_v8 }
 0x250   :  { %871 = vmatpush1.bf16.msra.mxu0 %v3368_v5 }
 0x252   :  { %912 = vmatpush1.bf16.msra.mxu1 %v3378_v10 }
 0x253   :  { %889 = vmatmul.mubr.bf16.vlgmr.msra.gmra.mrb[0].mxu0 %v663_v9 }
 0x255   :  { %930 = vmatmul.mubr.bf16.vlgmr.msra.gmra.mrb[0].mxu1 %v663_v9 }
 0x2b3   :  { %v970_v39 = vpop.permute.xlu0 %969 }
 0x2b4   :  { %vm971_vm4 = vcmp.eq.s32.totalorder %v970_v39, 1 }
 0x326   :  { %v890_v13 = vpop.f32.mrb[0].mxu0 }
 0x327   :  { %v938_v14 = vadd.f32 %v890_v13, %v659_v11  ;;  %v892_v15 = vpop.f32.mrb[1].mxu0 }
 0x328   :  { %v939_v16 = vadd.f32 %v892_v15, %v660_v12  ;;  %v894_v17 = vpop.f32.mrb[2].mxu0  ;;  %v931_v26 = vpop.f32.mrb[0].mxu1 }
 0x329   :  { %v3017_v18 = vmul.f32 -1.442695, %v938_v14  ;;  %v895_v19 = vpop.f32.mrb[3].mxu0  ;;  %v933_v27 = vpop.f32.mrb[1].mxu1  ;;  %v940_v23 = vadd.f32 %v931_v26, %v661_v22 }
 0x32a   :  { %v3018_v20 = vmul.f32 -1.442695, %v939_v16  ;;  %v941_v28 = vadd.f32 %v933_v27, %v662_v21  ;;  %v935_v29 = vpop.f32.mrb[2].mxu1 }
 0x32b   :  { %3379 = vpow2.f32 %v3017_v18  ;;  %v936_v30 = vpop.f32.mrb[3].mxu1 }
 0x32c   :  { %3381 = vpow2.f32 %v3018_v20  ;;  %v3019_v31 = vmul.f32 -1.442695, %v941_v28 }
 0x32e   :  { %3383 = vpow2.f32 %v3019_v31 }
 0x32f   :  { %3385 = vtanh.f32 %v940_v23 }
 0x335   :  { %v3380_v24 = vpop.eup %3379 }
 0x336   :  { %v3382_v32 = vpop.eup %3381  ;;  %v945_v25 = vadd.f32 1.0, %v3380_v24 }
 0x337   :  { %v951_v33 = vadd.f32 1.0, %v3382_v32 }
 0x338   :  { %3387 = vrcp.f32 %v945_v25  ;;  %v3384_v34 = vpop.eup %3383 }
 0x339   :  { %3389 = vrcp.f32 %v951_v33  ;;  %v3386_v35 = vpop.eup %3385  ;;  %v958_v38 = vadd.f32 1.0, %v3384_v34 }
 0x33b   :  { %3391 = vrcp.f32 %v958_v38 }
 0x342   :  { %v3388_v37 = vpop.eup %3387 }
 0x343   :  { %v3390_v40 = vpop.eup %3389  ;;  %v962_v41 = vmul.f32 %v3388_v37, %v3386_v35 }
 0x344   :  { %v961_v42 = vmul.f32 %v3390_v40, %v658_v36 }
 0x345   :  { %v3392_v45 = vpop.eup %3391 }
 0x346   :  { %v963_v43 = vadd.f32 %v962_v41, %v961_v42 }
 0x348   :  { %3393 = vtanh.f32 %v963_v43  ;;  %v974_v44 = vsel %vm971_vm4, %v963_v43, %v658_v36 }
 0x349   :  { %975 = vst [vmem:[#allocation4] sm:$0xff] %v974_v44 }
 0x352   :  { %v3394_v46 = vpop.eup %3393 }
 0x353   :  { %v965_v47 = vmul.f32 %v3394_v46, %v3392_v45 }
 0x355   :  { %v972_v48 = vsel %vm971_vm4, %v965_v47, %v657_v6 }
 0x356   :  { %973 = vst [vmem:[#allocation3] sm:$0xff] %v972_v48 }
 0x357 PF:  { %p3020_p10 = scmp.le.s32.totalorder %s3996_s0, 2 }
 0x358   :  { %v3396_v49 = vld [vmem:[#allocation7 + $0x4] ss:$16 sps:$4 sm:$0xff] (!%p3020_p10)   ;;  %vm1289_vm5 = vcmp.gt.s32.totalorder (!%p3020_p10), %v3872_v2, 2  ;;  %v3398_v50 = vld [vmem:[#allocation7] ss:$16 sps:$4 sm:$0xff] (!%p3020_p10)   ;;  %v3816_v51 = vmov (!%p3020_p10), 0  }
 0x359   :  { %979 = sbr.rel (%p3020_p10) target bundleno = 1150 (0x47e), region = 37  ;;  %1211 = vmatprep.mubr.bf16.mxu0 (!%p3020_p10), %v3816_v51  ;;  %1252 = vmatprep.mubr.bf16.mxu1 (!%p3020_p10), %v3816_v51  ;;  %v1290_v52 = vsel (!%p3020_p10), %vm1289_vm5, 1, %v3816_v51  ;;  %v3399_v53 = vld [vmem:[#allocation7 + $0x24] ss:$16 sps:$4 sm:$0xff] (!%p3020_p10)   ;;  %v3401_v54 = vld [vmem:[#allocation7 + $0x20] ss:$16 sps:$4 sm:$0xff] (!%p3020_p10)  }
 0x35a   :  { %1179 = vmatprep.subr.bf16.mxu0 (!%p3020_p10), %v3396_v49  ;;  %3395 = vset.pattern.permute.xlu0 (!%p3020_p10), %v3816_v51  ;;  %v3402_v55 = vld [vmem:[#allocation7 + $0x44] ss:$16 sps:$4 sm:$0xff] (!%p3020_p10)   ;;  %v3407_v56 = vld [vmem:[#allocation7 + $0xc] ss:$16 sps:$4 sm:$0xff] (!%p3020_p10)   ;;  %v3410_v57 = vld [vmem:[#allocation7 + $0x8] ss:$16 sps:$4 sm:$0xff] (!%p3020_p10)  }
 0x35b   :  { %1180 = vmatpush1.bf16.msra.mxu0 (!%p3020_p10), %v3398_v50  ;;  %1292 = vperm.xlu0 (!%p3020_p10), %3395, %v1290_v52   ;;  %v3404_v58 = vld [vmem:[#allocation7 + $0x40] ss:$16 sps:$4 sm:$0xff] (!%p3020_p10)   ;;  %v3405_v59 = vld [vmem:[#allocation7 + $0x64] ss:$16 sps:$4 sm:$0xff] (!%p3020_p10)   ;;  %v3413_v60 = vld [vmem:[#allocation7 + $0x2c] ss:$16 sps:$4 sm:$0xff] (!%p3020_p10)  }
 0x35c   :  { %1181 = vmatprep.subr.bf16.mxu0 (!%p3020_p10), %v3399_v53  ;;  %1220 = vmatprep.subr.bf16.mxu1 (!%p3020_p10), %v3407_v56  ;;  %v3416_v61 = vld [vmem:[#allocation7 + $0x28] ss:$16 sps:$4 sm:$0xff] (!%p3020_p10)   ;;  %v3409_v62 = vld [vmem:[#allocation7 + $0x60] ss:$16 sps:$4 sm:$0xff] (!%p3020_p10)   ;;  %v3411_v63 = vld [vmem:[#allocation7 + $0x84] ss:$16 sps:$4 sm:$0xff] (!%p3020_p10)  }
 0x35d   :  { %1221 = vmatpush1.bf16.msra.mxu1 (!%p3020_p10), %v3410_v57  ;;  %v3419_v0 = vld [vmem:[#allocation7 + $0x4c] ss:$16 sps:$4 sm:$0xff] (!%p3020_p10)   ;;  %v3422_v1 = vld [vmem:[#allocation7 + $0x48] ss:$16 sps:$4 sm:$0xff] (!%p3020_p10)   ;;  %v3415_v4 = vld [vmem:[#allocation7 + $0x80] ss:$16 sps:$4 sm:$0xff] (!%p3020_p10)  }
 0x35e   :  { %1222 = vmatprep.subr.bf16.mxu1 (!%p3020_p10), %v3413_v60  ;;  %v3425_v3 = vld [vmem:[#allocation7 + $0x6c] ss:$16 sps:$4 sm:$0xff] (!%p3020_p10)   ;;  %v3417_v5 = vld [vmem:[#allocation7 + $0xa4] ss:$16 sps:$4 sm:$0xff] (!%p3020_p10)   ;;  %v3428_v6 = vld [vmem:[#allocation7 + $0x68] ss:$16 sps:$4 sm:$0xff] (!%p3020_p10)  }
 0x35f   :  { %1182 = vmatpush1.bf16.msra.mxu0 (!%p3020_p10), %v3401_v54  ;;  %v3431_v7 = vld [vmem:[#allocation7 + $0x8c] ss:$16 sps:$4 sm:$0xff] (!%p3020_p10)   ;;  %v3421_v8 = vld [vmem:[#allocation7 + $0xa0] ss:$16 sps:$4 sm:$0xff] (!%p3020_p10)   ;;  %v3423_v9 = vld [vmem:[#allocation7 + $0xc4] ss:$16 sps:$4 sm:$0xff] (!%p3020_p10)  }
 0x360   :  { %1183 = vmatprep.subr.bf16.mxu0 %v3402_v55  ;;  %v3434_v10 = vld [vmem:[#allocation7 + $0x88] ss:$16 sps:$4 sm:$0xff]   ;;  %v3435_v11 = vld [vmem:[#allocation7 + $0xac] ss:$16 sps:$4 sm:$0xff]   ;;  %v3427_v12 = vld [vmem:[#allocation7 + $0xc0] ss:$16 sps:$4 sm:$0xff]  }
 0x361   :  { %1223 = vmatpush1.bf16.msra.mxu1 %v3416_v61  ;;  %v3429_v13 = vld [vmem:[#allocation7 + $0xe4] ss:$16 sps:$4 sm:$0xff]   ;;  %v3437_v14 = vld [vmem:[#allocation7 + $0xa8] ss:$16 sps:$4 sm:$0xff]   ;;  %v3438_v15 = vld [vmem:[#allocation7 + $0xcc] ss:$16 sps:$4 sm:$0xff]  }
 0x362   :  { %1224 = vmatprep.subr.bf16.mxu1 %v3419_v0  ;;  %v3433_v16 = vld [vmem:[#allocation7 + $0xe0] ss:$16 sps:$4 sm:$0xff]   ;;  %v3440_v18 = vld [vmem:[#allocation7 + $0xc8] ss:$16 sps:$4 sm:$0xff]   ;;  %v3441_v19 = vld [vmem:[#allocation7 + $0xec] ss:$16 sps:$4 sm:$0xff]  }
 0x363   :  { %1184 = vmatpush1.bf16.msra.mxu0 %v3404_v58  ;;  %v980_v17 = vld [vmem:[#allocation3] sm:$0xff]  ;;  %v3443_v21 = vld [vmem:[#allocation7 + $0xe8] ss:$16 sps:$4 sm:$0xff]   ;;  %v984_v38 = vld [vmem:[#allocation2 + $0x50] sm:$0xff] }
 0x364   :  { %1185 = vmatprep.subr.bf16.mxu0 %v3405_v59  ;;  %v986_v20 = vpack.c.bf16 %v980_v17, %v980_v17  ;;  %v982_v26 = vld [vmem:[#allocation2 + $0x40] sm:$0xff]  ;;  %v983_v27 = vld [vmem:[#allocation2 + $0x48] sm:$0xff]  ;;  %v985_v25 = vld [vmem:[#allocation2 + $0x58] sm:$0xff] }
 0x365   :  { %1225 = vmatpush1.bf16.msra.mxu1 %v3422_v1  ;;  %v981_v47 = vld [vmem:[#allocation4] sm:$0xff] }
 0x366   :  { %1226 = vmatprep.subr.bf16.mxu1 %v3425_v3 }
 0x367   :  { %1186 = vmatpush1.bf16.msra.mxu0 %v3409_v62 }
 0x368   :  { %1187 = vmatprep.subr.bf16.mxu0 %v3411_v63 }
 0x369   :  { %1227 = vmatpush1.bf16.msra.mxu1 %v3428_v6 }
 0x36a   :  { %1228 = vmatprep.subr.bf16.mxu1 %v3431_v7 }
 0x36b   :  { %1188 = vmatpush1.bf16.msra.mxu0 %v3415_v4 }
 0x36c   :  { %1189 = vmatprep.subr.bf16.mxu0 %v3417_v5 }
 0x36d   :  { %1229 = vmatpush1.bf16.msra.mxu1 %v3434_v10 }
 0x36e   :  { %1230 = vmatprep.subr.bf16.mxu1 %v3435_v11 }
 0x36f   :  { %1190 = vmatpush1.bf16.msra.mxu0 %v3421_v8 }
 0x370   :  { %1191 = vmatprep.subr.bf16.mxu0 %v3423_v9 }
 0x371   :  { %1231 = vmatpush1.bf16.msra.mxu1 %v3437_v14 }
 0x372   :  { %1232 = vmatprep.subr.bf16.mxu1 %v3438_v15 }
 0x373   :  { %1192 = vmatpush1.bf16.msra.mxu0 %v3427_v12 }
 0x374   :  { %1193 = vmatprep.subr.bf16.mxu0 %v3429_v13 }
 0x375   :  { %1233 = vmatpush1.bf16.msra.mxu1 %v3440_v18 }
 0x376   :  { %1234 = vmatprep.subr.bf16.mxu1 %v3441_v19 }
 0x377   :  { %1194 = vmatpush1.bf16.msra.mxu0 %v3433_v16 }
 0x379   :  { %1235 = vmatpush1.bf16.msra.mxu1 %v3443_v21 }
 0x37a   :  { %1212 = vmatmul.mubr.bf16.vlgmr.msra.gmra.mrb[0].mxu0 %v986_v20 }
 0x37c   :  { %1253 = vmatmul.mubr.bf16.vlgmr.msra.gmra.mrb[0].mxu1 %v986_v20 }
 0x3da   :  { %v1293_v50 = vpop.permute.xlu0 %1292 }
 0x3db   :  { %vm1294_vm6 = vcmp.eq.s32.totalorder %v1293_v50, 1 }
 0x44d   :  { %v1213_v28 = vpop.f32.mrb[0].mxu0 }
 0x44e   :  { %v1261_v29 = vadd.f32 %v1213_v28, %v982_v26  ;;  %v1215_v30 = vpop.f32.mrb[1].mxu0 }
 0x44f   :  { %v1262_v22 = vadd.f32 %v1215_v30, %v983_v27  ;;  %v1217_v31 = vpop.f32.mrb[2].mxu0  ;;  %v1254_v33 = vpop.f32.mrb[0].mxu1 }
 0x450   :  { %v3053_v23 = vmul.f32 -1.442695, %v1261_v29  ;;  %v1218_v24 = vpop.f32.mrb[3].mxu0  ;;  %v1256_v34 = vpop.f32.mrb[1].mxu1  ;;  %v1263_v40 = vadd.f32 %v1254_v33, %v984_v38 }
 0x451   :  { %v3054_v32 = vmul.f32 -1.442695, %v1262_v22  ;;  %v1264_v35 = vadd.f32 %v1256_v34, %v985_v25  ;;  %v1258_v36 = vpop.f32.mrb[2].mxu1 }
 0x452   :  { %3444 = vpow2.f32 %v3053_v23  ;;  %v1259_v37 = vpop.f32.mrb[3].mxu1 }
 0x453   :  { %3446 = vpow2.f32 %v3054_v32  ;;  %v3055_v39 = vmul.f32 -1.442695, %v1264_v35 }
 0x455   :  { %3448 = vpow2.f32 %v3055_v39 }
 0x456   :  { %3450 = vtanh.f32 %v1263_v40 }
 0x45c   :  { %v3445_v41 = vpop.eup %3444 }
 0x45d   :  { %v3447_v42 = vpop.eup %3446  ;;  %v1268_v43 = vadd.f32 1.0, %v3445_v41 }
 0x45e   :  { %v1274_v44 = vadd.f32 1.0, %v3447_v42 }
 0x45f   :  { %3452 = vrcp.f32 %v1268_v43  ;;  %v3449_v45 = vpop.eup %3448 }
 0x460   :  { %3454 = vrcp.f32 %v1274_v44  ;;  %v3451_v46 = vpop.eup %3450  ;;  %v1281_v49 = vadd.f32 1.0, %v3449_v45 }
 0x462   :  { %3456 = vrcp.f32 %v1281_v49 }
 0x469   :  { %v3453_v48 = vpop.eup %3452 }
 0x46a   :  { %v3455_v51 = vpop.eup %3454  ;;  %v1285_v52 = vmul.f32 %v3453_v48, %v3451_v46 }
 0x46b   :  { %v1284_v53 = vmul.f32 %v3455_v51, %v981_v47 }
 0x46c   :  { %v3457_v56 = vpop.eup %3456 }
 0x46d   :  { %v1286_v54 = vadd.f32 %v1285_v52, %v1284_v53 }
 0x46f   :  { %3458 = vtanh.f32 %v1286_v54  ;;  %v1297_v55 = vsel %vm1294_vm6, %v1286_v54, %v981_v47 }
 0x470   :  { %1298 = vst [vmem:[#allocation4] sm:$0xff] %v1297_v55 }
 0x479   :  { %v3459_v57 = vpop.eup %3458 }
 0x47a   :  { %v1288_v58 = vmul.f32 %v3459_v57, %v3457_v56 }
 0x47c   :  { %v1295_v59 = vsel %vm1294_vm6, %v1288_v58, %v980_v17 }
 0x47d   :  { %1296 = vst [vmem:[#allocation3] sm:$0xff] %v1295_v59 }
 0x47e PF:  { %p3056_p11 = scmp.le.s32.totalorder %s3996_s0, 3 }
 0x47f   :  { %v3461_v60 = vld [vmem:[#allocation7 + $0x4] ss:$16 sps:$4 sm:$0xff] (!%p3056_p11)   ;;  %vm1612_vm7 = vcmp.gt.s32.totalorder (!%p3056_p11), %v3872_v2, 3  ;;  %v3463_v61 = vld [vmem:[#allocation7] ss:$16 sps:$4 sm:$0xff] (!%p3056_p11)   ;;  %v3817_v62 = vmov (!%p3056_p11), 0  }
 0x480   :  { %1302 = sbr.rel (%p3056_p11) target bundleno = 1445 (0x5a5), region = 41  ;;  %1534 = vmatprep.mubr.bf16.mxu0 (!%p3056_p11), %v3817_v62  ;;  %1575 = vmatprep.mubr.bf16.mxu1 (!%p3056_p11), %v3817_v62  ;;  %v1613_v63 = vsel (!%p3056_p11), %vm1612_vm7, 1, %v3817_v62  ;;  %v3464_v0 = vld [vmem:[#allocation7 + $0x24] ss:$16 sps:$4 sm:$0xff] (!%p3056_p11)   ;;  %v3466_v1 = vld [vmem:[#allocation7 + $0x20] ss:$16 sps:$4 sm:$0xff] (!%p3056_p11)  }
 0x481   :  { %1502 = vmatprep.subr.bf16.mxu0 (!%p3056_p11), %v3461_v60  ;;  %3460 = vset.pattern.permute.xlu0 (!%p3056_p11), %v3817_v62  ;;  %v3467_v3 = vld [vmem:[#allocation7 + $0x44] ss:$16 sps:$4 sm:$0xff] (!%p3056_p11)   ;;  %v3472_v4 = vld [vmem:[#allocation7 + $0xc] ss:$16 sps:$4 sm:$0xff] (!%p3056_p11)   ;;  %v3475_v5 = vld [vmem:[#allocation7 + $0x8] ss:$16 sps:$4 sm:$0xff] (!%p3056_p11)  }
 0x482   :  { %1503 = vmatpush1.bf16.msra.mxu0 (!%p3056_p11), %v3463_v61  ;;  %1615 = vperm.xlu0 (!%p3056_p11), %3460, %v1613_v63   ;;  %v3469_v6 = vld [vmem:[#allocation7 + $0x40] ss:$16 sps:$4 sm:$0xff] (!%p3056_p11)   ;;  %v3470_v7 = vld [vmem:[#allocation7 + $0x64] ss:$16 sps:$4 sm:$0xff] (!%p3056_p11)   ;;  %v3478_v8 = vld [vmem:[#allocation7 + $0x2c] ss:$16 sps:$4 sm:$0xff] (!%p3056_p11)  }
 0x483   :  { %1504 = vmatprep.subr.bf16.mxu0 (!%p3056_p11), %v3464_v0  ;;  %1543 = vmatprep.subr.bf16.mxu1 (!%p3056_p11), %v3472_v4  ;;  %v3481_v9 = vld [vmem:[#allocation7 + $0x28] ss:$16 sps:$4 sm:$0xff] (!%p3056_p11)   ;;  %v3474_v10 = vld [vmem:[#allocation7 + $0x60] ss:$16 sps:$4 sm:$0xff] (!%p3056_p11)   ;;  %v3476_v11 = vld [vmem:[#allocation7 + $0x84] ss:$16 sps:$4 sm:$0xff] (!%p3056_p11)  }
 0x484   :  { %1544 = vmatpush1.bf16.msra.mxu1 (!%p3056_p11), %v3475_v5  ;;  %v3484_v12 = vld [vmem:[#allocation7 + $0x4c] ss:$16 sps:$4 sm:$0xff] (!%p3056_p11)   ;;  %v3487_v13 = vld [vmem:[#allocation7 + $0x48] ss:$16 sps:$4 sm:$0xff] (!%p3056_p11)   ;;  %v3480_v15 = vld [vmem:[#allocation7 + $0x80] ss:$16 sps:$4 sm:$0xff] (!%p3056_p11)  }
 0x485   :  { %1545 = vmatprep.subr.bf16.mxu1 (!%p3056_p11), %v3478_v8  ;;  %v3490_v14 = vld [vmem:[#allocation7 + $0x6c] ss:$16 sps:$4 sm:$0xff] (!%p3056_p11)   ;;  %v3482_v16 = vld [vmem:[#allocation7 + $0xa4] ss:$16 sps:$4 sm:$0xff] (!%p3056_p11)   ;;  %v3493_v17 = vld [vmem:[#allocation7 + $0x68] ss:$16 sps:$4 sm:$0xff] (!%p3056_p11)  }
 0x486   :  { %1505 = vmatpush1.bf16.msra.mxu0 (!%p3056_p11), %v3466_v1  ;;  %v3496_v18 = vld [vmem:[#allocation7 + $0x8c] ss:$16 sps:$4 sm:$0xff] (!%p3056_p11)   ;;  %v3486_v19 = vld [vmem:[#allocation7 + $0xa0] ss:$16 sps:$4 sm:$0xff] (!%p3056_p11)   ;;  %v3488_v20 = vld [vmem:[#allocation7 + $0xc4] ss:$16 sps:$4 sm:$0xff] (!%p3056_p11)  }
 0x487   :  { %1506 = vmatprep.subr.bf16.mxu0 %v3467_v3  ;;  %v3499_v21 = vld [vmem:[#allocation7 + $0x88] ss:$16 sps:$4 sm:$0xff]   ;;  %v3500_v26 = vld [vmem:[#allocation7 + $0xac] ss:$16 sps:$4 sm:$0xff]   ;;  %v3492_v27 = vld [vmem:[#allocation7 + $0xc0] ss:$16 sps:$4 sm:$0xff]  }
 0x488   :  { %1546 = vmatpush1.bf16.msra.mxu1 %v3481_v9  ;;  %v3494_v28 = vld [vmem:[#allocation7 + $0xe4] ss:$16 sps:$4 sm:$0xff]   ;;  %v3502_v29 = vld [vmem:[#allocation7 + $0xa8] ss:$16 sps:$4 sm:$0xff]   ;;  %v3503_v30 = vld [vmem:[#allocation7 + $0xcc] ss:$16 sps:$4 sm:$0xff]  }
 0x489   :  { %1547 = vmatprep.subr.bf16.mxu1 %v3484_v12  ;;  %v3498_v22 = vld [vmem:[#allocation7 + $0xe0] ss:$16 sps:$4 sm:$0xff]   ;;  %v3505_v23 = vld [vmem:[#allocation7 + $0xc8] ss:$16 sps:$4 sm:$0xff]   ;;  %v3506_v24 = vld [vmem:[#allocation7 + $0xec] ss:$16 sps:$4 sm:$0xff]  }
 0x48a   :  { %1507 = vmatpush1.bf16.msra.mxu0 %v3469_v6  ;;  %v1303_v31 = vld [vmem:[#allocation3] sm:$0xff]  ;;  %v3508_v25 = vld [vmem:[#allocation7 + $0xe8] ss:$16 sps:$4 sm:$0xff]   ;;  %v1307_v49 = vld [vmem:[#allocation2 + $0x70] sm:$0xff] }
 0x48b   :  { %1508 = vmatprep.subr.bf16.mxu0 %v3470_v7  ;;  %v1309_v32 = vpack.c.bf16 %v1303_v31, %v1303_v31  ;;  %v1305_v33 = vld [vmem:[#allocation2 + $0x60] sm:$0xff]  ;;  %v1306_v34 = vld [vmem:[#allocation2 + $0x68] sm:$0xff]  ;;  %v1308_v43 = vld [vmem:[#allocation2 + $0x78] sm:$0xff] }
 0x48c   :  { %1548 = vmatpush1.bf16.msra.mxu1 %v3487_v13  ;;  %v1304_v58 = vld [vmem:[#allocation4] sm:$0xff] }
 0x48d   :  { %1549 = vmatprep.subr.bf16.mxu1 %v3490_v14 }
 0x48e   :  { %1509 = vmatpush1.bf16.msra.mxu0 %v3474_v10 }
 0x48f   :  { %1510 = vmatprep.subr.bf16.mxu0 %v3476_v11 }
 0x490   :  { %1550 = vmatpush1.bf16.msra.mxu1 %v3493_v17 }
 0x491   :  { %1551 = vmatprep.subr.bf16.mxu1 %v3496_v18 }
 0x492   :  { %1511 = vmatpush1.bf16.msra.mxu0 %v3480_v15 }
 0x493   :  { %1512 = vmatprep.subr.bf16.mxu0 %v3482_v16 }
 0x494   :  { %1552 = vmatpush1.bf16.msra.mxu1 %v3499_v21 }
 0x495   :  { %1553 = vmatprep.subr.bf16.mxu1 %v3500_v26 }
 0x496   :  { %1513 = vmatpush1.bf16.msra.mxu0 %v3486_v19 }
 0x497   :  { %1514 = vmatprep.subr.bf16.mxu0 %v3488_v20 }
 0x498   :  { %1554 = vmatpush1.bf16.msra.mxu1 %v3502_v29 }
 0x499   :  { %1555 = vmatprep.subr.bf16.mxu1 %v3503_v30 }
 0x49a   :  { %1515 = vmatpush1.bf16.msra.mxu0 %v3492_v27 }
 0x49b   :  { %1516 = vmatprep.subr.bf16.mxu0 %v3494_v28 }
 0x49c   :  { %1556 = vmatpush1.bf16.msra.mxu1 %v3505_v23 }
 0x49d   :  { %1557 = vmatprep.subr.bf16.mxu1 %v3506_v24 }
 0x49e   :  { %1517 = vmatpush1.bf16.msra.mxu0 %v3498_v22 }
 0x4a0   :  { %1558 = vmatpush1.bf16.msra.mxu1 %v3508_v25 }
 0x4a1   :  { %1535 = vmatmul.mubr.bf16.vlgmr.msra.gmra.mrb[0].mxu0 %v1309_v32 }
 0x4a3   :  { %1576 = vmatmul.mubr.bf16.vlgmr.msra.gmra.mrb[0].mxu1 %v1309_v32 }
 0x501   :  { %v1616_v61 = vpop.permute.xlu0 %1615 }
 0x502   :  { %vm1617_vm8 = vcmp.eq.s32.totalorder %v1616_v61, 1 }
 0x574   :  { %v1536_v35 = vpop.f32.mrb[0].mxu0 }
 0x575   :  { %v1584_v36 = vadd.f32 %v1536_v35, %v1305_v33  ;;  %v1538_v37 = vpop.f32.mrb[1].mxu0 }
 0x576   :  { %v1585_v38 = vadd.f32 %v1538_v37, %v1306_v34  ;;  %v1540_v39 = vpop.f32.mrb[2].mxu0  ;;  %v1577_v44 = vpop.f32.mrb[0].mxu1 }
 0x577   :  { %v3089_v40 = vmul.f32 -1.442695, %v1584_v36  ;;  %v1541_v41 = vpop.f32.mrb[3].mxu0  ;;  %v1579_v45 = vpop.f32.mrb[1].mxu1  ;;  %v1586_v51 = vadd.f32 %v1577_v44, %v1307_v49 }
 0x578   :  { %v3090_v42 = vmul.f32 -1.442695, %v1585_v38  ;;  %v1587_v46 = vadd.f32 %v1579_v45, %v1308_v43  ;;  %v1581_v47 = vpop.f32.mrb[2].mxu1 }
 0x579   :  { %3509 = vpow2.f32 %v3089_v40  ;;  %v1582_v48 = vpop.f32.mrb[3].mxu1 }
 0x57a   :  { %3511 = vpow2.f32 %v3090_v42  ;;  %v3091_v50 = vmul.f32 -1.442695, %v1587_v46 }
 0x57c   :  { %3513 = vpow2.f32 %v3091_v50 }
 0x57d   :  { %3515 = vtanh.f32 %v1586_v51 }
 0x583   :  { %v3510_v52 = vpop.eup %3509 }
 0x584   :  { %v3512_v53 = vpop.eup %3511  ;;  %v1591_v54 = vadd.f32 1.0, %v3510_v52 }
 0x585   :  { %v1597_v55 = vadd.f32 1.0, %v3512_v53 }
 0x586   :  { %3517 = vrcp.f32 %v1591_v54  ;;  %v3514_v56 = vpop.eup %3513 }
 0x587   :  { %3519 = vrcp.f32 %v1597_v55  ;;  %v3516_v57 = vpop.eup %3515  ;;  %v1604_v60 = vadd.f32 1.0, %v3514_v56 }
 0x589   :  { %3521 = vrcp.f32 %v1604_v60 }
 0x590   :  { %v3518_v59 = vpop.eup %3517 }
 0x591   :  { %v3520_v62 = vpop.eup %3519  ;;  %v1608_v63 = vmul.f32 %v3518_v59, %v3516_v57 }
 0x592   :  { %v1607_v0 = vmul.f32 %v3520_v62, %v1304_v58 }
 0x593   :  { %v3522_v4 = vpop.eup %3521 }
 0x594   :  { %v1609_v1 = vadd.f32 %v1608_v63, %v1607_v0 }
 0x596   :  { %3523 = vtanh.f32 %v1609_v1  ;;  %v1620_v3 = vsel %vm1617_vm8, %v1609_v1, %v1304_v58 }
 0x597   :  { %1621 = vst [vmem:[#allocation4] sm:$0xff] %v1620_v3 }
 0x5a0   :  { %v3524_v5 = vpop.eup %3523 }
 0x5a1   :  { %v1611_v6 = vmul.f32 %v3524_v5, %v3522_v4 }
 0x5a3   :  { %v1618_v7 = vsel %vm1617_vm8, %v1611_v6, %v1303_v31 }
 0x5a4   :  { %1619 = vst [vmem:[#allocation3] sm:$0xff] %v1618_v7 }
 0x5a5 PF:  { %p3092_p12 = scmp.le.s32.totalorder %s3996_s0, 4 }
 0x5a6   :  { %v3526_v8 = vld [vmem:[#allocation7 + $0x4] ss:$16 sps:$4 sm:$0xff] (!%p3092_p12)   ;;  %vm1935_vm9 = vcmp.gt.s32.totalorder (!%p3092_p12), %v3872_v2, 4  ;;  %v3528_v9 = vld [vmem:[#allocation7] ss:$16 sps:$4 sm:$0xff] (!%p3092_p12)   ;;  %v3818_v10 = vmov (!%p3092_p12), 0  }
 0x5a7   :  { %1625 = sbr.rel (%p3092_p12) target bundleno = 1740 (0x6cc), region = 45  ;;  %1857 = vmatprep.mubr.bf16.mxu0 (!%p3092_p12), %v3818_v10  ;;  %1898 = vmatprep.mubr.bf16.mxu1 (!%p3092_p12), %v3818_v10  ;;  %v1936_v11 = vsel (!%p3092_p12), %vm1935_vm9, 1, %v3818_v10  ;;  %v3529_v12 = vld [vmem:[#allocation7 + $0x24] ss:$16 sps:$4 sm:$0xff] (!%p3092_p12)   ;;  %v3531_v13 = vld [vmem:[#allocation7 + $0x20] ss:$16 sps:$4 sm:$0xff] (!%p3092_p12)  }
 0x5a8   :  { %1825 = vmatprep.subr.bf16.mxu0 (!%p3092_p12), %v3526_v8  ;;  %3525 = vset.pattern.permute.xlu0 (!%p3092_p12), %v3818_v10  ;;  %v3532_v14 = vld [vmem:[#allocation7 + $0x44] ss:$16 sps:$4 sm:$0xff] (!%p3092_p12)   ;;  %v3537_v15 = vld [vmem:[#allocation7 + $0xc] ss:$16 sps:$4 sm:$0xff] (!%p3092_p12)   ;;  %v3540_v16 = vld [vmem:[#allocation7 + $0x8] ss:$16 sps:$4 sm:$0xff] (!%p3092_p12)  }
 0x5a9   :  { %1826 = vmatpush1.bf16.msra.mxu0 (!%p3092_p12), %v3528_v9  ;;  %1938 = vperm.xlu0 (!%p3092_p12), %3525, %v1936_v11   ;;  %v3534_v17 = vld [vmem:[#allocation7 + $0x40] ss:$16 sps:$4 sm:$0xff] (!%p3092_p12)   ;;  %v3535_v18 = vld [vmem:[#allocation7 + $0x64] ss:$16 sps:$4 sm:$0xff] (!%p3092_p12)   ;;  %v3543_v19 = vld [vmem:[#allocation7 + $0x2c] ss:$16 sps:$4 sm:$0xff] (!%p3092_p12)  }
 0x5aa   :  { %1827 = vmatprep.subr.bf16.mxu0 (!%p3092_p12), %v3529_v12  ;;  %1866 = vmatprep.subr.bf16.mxu1 (!%p3092_p12), %v3537_v15  ;;  %v3546_v20 = vld [vmem:[#allocation7 + $0x28] ss:$16 sps:$4 sm:$0xff] (!%p3092_p12)   ;;  %v3539_v21 = vld [vmem:[#allocation7 + $0x60] ss:$16 sps:$4 sm:$0xff] (!%p3092_p12)   ;;  %v3541_v26 = vld [vmem:[#allocation7 + $0x84] ss:$16 sps:$4 sm:$0xff] (!%p3092_p12)  }
 0x5ab   :  { %1867 = vmatpush1.bf16.msra.mxu1 (!%p3092_p12), %v3540_v16  ;;  %v3549_v27 = vld [vmem:[#allocation7 + $0x4c] ss:$16 sps:$4 sm:$0xff] (!%p3092_p12)   ;;  %v3552_v28 = vld [vmem:[#allocation7 + $0x48] ss:$16 sps:$4 sm:$0xff] (!%p3092_p12)   ;;  %v3545_v30 = vld [vmem:[#allocation7 + $0x80] ss:$16 sps:$4 sm:$0xff] (!%p3092_p12)  }
 0x5ac   :  { %1868 = vmatprep.subr.bf16.mxu1 (!%p3092_p12), %v3543_v19  ;;  %v3555_v29 = vld [vmem:[#allocation7 + $0x6c] ss:$16 sps:$4 sm:$0xff] (!%p3092_p12)   ;;  %v3547_v22 = vld [vmem:[#allocation7 + $0xa4] ss:$16 sps:$4 sm:$0xff] (!%p3092_p12)   ;;  %v3558_v31 = vld [vmem:[#allocation7 + $0x68] ss:$16 sps:$4 sm:$0xff] (!%p3092_p12)  }
 0x5ad   :  { %1828 = vmatpush1.bf16.msra.mxu0 (!%p3092_p12), %v3531_v13  ;;  %v3561_v23 = vld [vmem:[#allocation7 + $0x8c] ss:$16 sps:$4 sm:$0xff] (!%p3092_p12)   ;;  %v3551_v24 = vld [vmem:[#allocation7 + $0xa0] ss:$16 sps:$4 sm:$0xff] (!%p3092_p12)   ;;  %v3553_v32 = vld [vmem:[#allocation7 + $0xc4] ss:$16 sps:$4 sm:$0xff] (!%p3092_p12)  }
 0x5ae   :  { %1829 = vmatprep.subr.bf16.mxu0 %v3532_v14  ;;  %v3564_v25 = vld [vmem:[#allocation7 + $0x88] ss:$16 sps:$4 sm:$0xff]   ;;  %v3565_v33 = vld [vmem:[#allocation7 + $0xac] ss:$16 sps:$4 sm:$0xff]   ;;  %v3557_v34 = vld [vmem:[#allocation7 + $0xc0] ss:$16 sps:$4 sm:$0xff]  }
 0x5af   :  { %1869 = vmatpush1.bf16.msra.mxu1 %v3546_v20  ;;  %v3559_v35 = vld [vmem:[#allocation7 + $0xe4] ss:$16 sps:$4 sm:$0xff]   ;;  %v3567_v36 = vld [vmem:[#allocation7 + $0xa8] ss:$16 sps:$4 sm:$0xff]   ;;  %v3568_v37 = vld [vmem:[#allocation7 + $0xcc] ss:$16 sps:$4 sm:$0xff]  }
 0x5b0   :  { %1870 = vmatprep.subr.bf16.mxu1 %v3549_v27  ;;  %v3563_v38 = vld [vmem:[#allocation7 + $0xe0] ss:$16 sps:$4 sm:$0xff]   ;;  %v3570_v40 = vld [vmem:[#allocation7 + $0xc8] ss:$16 sps:$4 sm:$0xff]   ;;  %v3571_v41 = vld [vmem:[#allocation7 + $0xec] ss:$16 sps:$4 sm:$0xff]  }
 0x5b1   :  { %1830 = vmatpush1.bf16.msra.mxu0 %v3534_v17  ;;  %v1626_v39 = vld [vmem:[#allocation3] sm:$0xff]  ;;  %v3573_v43 = vld [vmem:[#allocation7 + $0xe8] ss:$16 sps:$4 sm:$0xff]   ;;  %v1630_v60 = vld [vmem:[#allocation2 + $0x90] sm:$0xff] }
 0x5b2   :  { %1831 = vmatprep.subr.bf16.mxu0 %v3535_v18  ;;  %v1632_v42 = vpack.c.bf16 %v1626_v39, %v1626_v39  ;;  %v1628_v44 = vld [vmem:[#allocation2 + $0x80] sm:$0xff]  ;;  %v1629_v45 = vld [vmem:[#allocation2 + $0x88] sm:$0xff]  ;;  %v1631_v54 = vld [vmem:[#allocation2 + $0x98] sm:$0xff] }
 0x5b3   :  { %1871 = vmatpush1.bf16.msra.mxu1 %v3552_v28  ;;  %v1627_v6 = vld [vmem:[#allocation4] sm:$0xff] }
 0x5b4   :  { %1872 = vmatprep.subr.bf16.mxu1 %v3555_v29 }
 0x5b5   :  { %1832 = vmatpush1.bf16.msra.mxu0 %v3539_v21 }
 0x5b6   :  { %1833 = vmatprep.subr.bf16.mxu0 %v3541_v26 }
 0x5b7   :  { %1873 = vmatpush1.bf16.msra.mxu1 %v3558_v31 }
 0x5b8   :  { %1874 = vmatprep.subr.bf16.mxu1 %v3561_v23 }
 0x5b9   :  { %1834 = vmatpush1.bf16.msra.mxu0 %v3545_v30 }
 0x5ba   :  { %1835 = vmatprep.subr.bf16.mxu0 %v3547_v22 }
 0x5bb   :  { %1875 = vmatpush1.bf16.msra.mxu1 %v3564_v25 }
 0x5bc   :  { %1876 = vmatprep.subr.bf16.mxu1 %v3565_v33 }
 0x5bd   :  { %1836 = vmatpush1.bf16.msra.mxu0 %v3551_v24 }
 0x5be   :  { %1837 = vmatprep.subr.bf16.mxu0 %v3553_v32 }
 0x5bf   :  { %1877 = vmatpush1.bf16.msra.mxu1 %v3567_v36 }
 0x5c0   :  { %1878 = vmatprep.subr.bf16.mxu1 %v3568_v37 }
 0x5c1   :  { %1838 = vmatpush1.bf16.msra.mxu0 %v3557_v34 }
 0x5c2   :  { %1839 = vmatprep.subr.bf16.mxu0 %v3559_v35 }
 0x5c3   :  { %1879 = vmatpush1.bf16.msra.mxu1 %v3570_v40 }
 0x5c4   :  { %1880 = vmatprep.subr.bf16.mxu1 %v3571_v41 }
 0x5c5   :  { %1840 = vmatpush1.bf16.msra.mxu0 %v3563_v38 }
 0x5c7   :  { %1881 = vmatpush1.bf16.msra.mxu1 %v3573_v43 }
 0x5c8   :  { %1858 = vmatmul.mubr.bf16.vlgmr.msra.gmra.mrb[0].mxu0 %v1632_v42 }
 0x5ca   :  { %1899 = vmatmul.mubr.bf16.vlgmr.msra.gmra.mrb[0].mxu1 %v1632_v42 }
 0x628   :  { %v1939_v9 = vpop.permute.xlu0 %1938 }
 0x629   :  { %vm1940_vm10 = vcmp.eq.s32.totalorder %v1939_v9, 1 }
 0x69b   :  { %v1859_v46 = vpop.f32.mrb[0].mxu0 }
 0x69c   :  { %v1907_v47 = vadd.f32 %v1859_v46, %v1628_v44  ;;  %v1861_v48 = vpop.f32.mrb[1].mxu0 }
 0x69d   :  { %v1908_v49 = vadd.f32 %v1861_v48, %v1629_v45  ;;  %v1863_v50 = vpop.f32.mrb[2].mxu0  ;;  %v1900_v55 = vpop.f32.mrb[0].mxu1 }
 0x69e   :  { %v3125_v51 = vmul.f32 -1.442695, %v1907_v47  ;;  %v1864_v52 = vpop.f32.mrb[3].mxu0  ;;  %v1902_v56 = vpop.f32.mrb[1].mxu1  ;;  %v1909_v62 = vadd.f32 %v1900_v55, %v1630_v60 }
 0x69f   :  { %v3126_v53 = vmul.f32 -1.442695, %v1908_v49  ;;  %v1910_v57 = vadd.f32 %v1902_v56, %v1631_v54  ;;  %v1904_v58 = vpop.f32.mrb[2].mxu1 }
 0x6a0   :  { %3574 = vpow2.f32 %v3125_v51  ;;  %v1905_v59 = vpop.f32.mrb[3].mxu1 }
 0x6a1   :  { %3576 = vpow2.f32 %v3126_v53  ;;  %v3127_v61 = vmul.f32 -1.442695, %v1910_v57 }
 0x6a3   :  { %3578 = vpow2.f32 %v3127_v61 }
 0x6a4   :  { %3580 = vtanh.f32 %v1909_v62 }
 0x6aa   :  { %v3575_v63 = vpop.eup %3574 }
 0x6ab   :  { %v3577_v0 = vpop.eup %3576  ;;  %v1914_v1 = vadd.f32 1.0, %v3575_v63 }
 0x6ac   :  { %v1920_v3 = vadd.f32 1.0, %v3577_v0 }
 0x6ad   :  { %3582 = vrcp.f32 %v1914_v1  ;;  %v3579_v4 = vpop.eup %3578 }
 0x6ae   :  { %3584 = vrcp.f32 %v1920_v3  ;;  %v3581_v5 = vpop.eup %3580  ;;  %v1927_v8 = vadd.f32 1.0, %v3579_v4 }
 0x6b0   :  { %3586 = vrcp.f32 %v1927_v8 }
 0x6b7   :  { %v3583_v7 = vpop.eup %3582 }
 0x6b8   :  { %v3585_v10 = vpop.eup %3584  ;;  %v1931_v11 = vmul.f32 %v3583_v7, %v3581_v5 }
 0x6b9   :  { %v1930_v12 = vmul.f32 %v3585_v10, %v1627_v6 }
 0x6ba   :  { %v3587_v15 = vpop.eup %3586 }
 0x6bb   :  { %v1932_v13 = vadd.f32 %v1931_v11, %v1930_v12 }
 0x6bd   :  { %3588 = vtanh.f32 %v1932_v13  ;;  %v1943_v14 = vsel %vm1940_vm10, %v1932_v13, %v1627_v6 }
 0x6be   :  { %1944 = vst [vmem:[#allocation4] sm:$0xff] %v1943_v14 }
 0x6c7   :  { %v3589_v16 = vpop.eup %3588 }
 0x6c8   :  { %v1934_v17 = vmul.f32 %v3589_v16, %v3587_v15 }
 0x6ca   :  { %v1941_v18 = vsel %vm1940_vm10, %v1934_v17, %v1626_v39 }
 0x6cb   :  { %1942 = vst [vmem:[#allocation3] sm:$0xff] %v1941_v18 }
 0x6cc PF:  { %p3128_p13 = scmp.le.s32.totalorder %s3996_s0, 5 }
 0x6cd   :  { %v3591_v19 = vld [vmem:[#allocation7 + $0x4] ss:$16 sps:$4 sm:$0xff] (!%p3128_p13)   ;;  %vm2258_vm11 = vcmp.gt.s32.totalorder (!%p3128_p13), %v3872_v2, 5  ;;  %v3593_v20 = vld [vmem:[#allocation7] ss:$16 sps:$4 sm:$0xff] (!%p3128_p13)   ;;  %v3819_v21 = vmov (!%p3128_p13), 0  }
 0x6ce   :  { %1948 = sbr.rel (%p3128_p13) target bundleno = 2035 (0x7f3), region = 49  ;;  %2180 = vmatprep.mubr.bf16.mxu0 (!%p3128_p13), %v3819_v21  ;;  %2221 = vmatprep.mubr.bf16.mxu1 (!%p3128_p13), %v3819_v21  ;;  %v2259_v26 = vsel (!%p3128_p13), %vm2258_vm11, 1, %v3819_v21  ;;  %v3594_v27 = vld [vmem:[#allocation7 + $0x24] ss:$16 sps:$4 sm:$0xff] (!%p3128_p13)   ;;  %v3596_v28 = vld [vmem:[#allocation7 + $0x20] ss:$16 sps:$4 sm:$0xff] (!%p3128_p13)  }
 0x6cf   :  { %2148 = vmatprep.subr.bf16.mxu0 (!%p3128_p13), %v3591_v19  ;;  %3590 = vset.pattern.permute.xlu0 (!%p3128_p13), %v3819_v21  ;;  %v3597_v29 = vld [vmem:[#allocation7 + $0x44] ss:$16 sps:$4 sm:$0xff] (!%p3128_p13)   ;;  %v3602_v30 = vld [vmem:[#allocation7 + $0xc] ss:$16 sps:$4 sm:$0xff] (!%p3128_p13)   ;;  %v3605_v22 = vld [vmem:[#allocation7 + $0x8] ss:$16 sps:$4 sm:$0xff] (!%p3128_p13)  }
 0x6d0   :  { %2149 = vmatpush1.bf16.msra.mxu0 (!%p3128_p13), %v3593_v20  ;;  %2261 = vperm.xlu0 (!%p3128_p13), %3590, %v2259_v26   ;;  %v3599_v31 = vld [vmem:[#allocation7 + $0x40] ss:$16 sps:$4 sm:$0xff] (!%p3128_p13)   ;;  %v3600_v23 = vld [vmem:[#allocation7 + $0x64] ss:$16 sps:$4 sm:$0xff] (!%p3128_p13)   ;;  %v3608_v24 = vld [vmem:[#allocation7 + $0x2c] ss:$16 sps:$4 sm:$0xff] (!%p3128_p13)  }
 0x6d1   :  { %2150 = vmatprep.subr.bf16.mxu0 (!%p3128_p13), %v3594_v27  ;;  %2189 = vmatprep.subr.bf16.mxu1 (!%p3128_p13), %v3602_v30  ;;  %v3611_v32 = vld [vmem:[#allocation7 + $0x28] ss:$16 sps:$4 sm:$0xff] (!%p3128_p13)   ;;  %v3604_v25 = vld [vmem:[#allocation7 + $0x60] ss:$16 sps:$4 sm:$0xff] (!%p3128_p13)   ;;  %v3606_v33 = vld [vmem:[#allocation7 + $0x84] ss:$16 sps:$4 sm:$0xff] (!%p3128_p13)  }
 0x6d2   :  { %2190 = vmatpush1.bf16.msra.mxu1 (!%p3128_p13), %v3605_v22  ;;  %v3614_v34 = vld [vmem:[#allocation7 + $0x4c] ss:$16 sps:$4 sm:$0xff] (!%p3128_p13)   ;;  %v3617_v35 = vld [vmem:[#allocation7 + $0x48] ss:$16 sps:$4 sm:$0xff] (!%p3128_p13)   ;;  %v3610_v37 = vld [vmem:[#allocation7 + $0x80] ss:$16 sps:$4 sm:$0xff] (!%p3128_p13)  }
 0x6d3   :  { %2191 = vmatprep.subr.bf16.mxu1 (!%p3128_p13), %v3608_v24  ;;  %v3620_v36 = vld [vmem:[#allocation7 + $0x6c] ss:$16 sps:$4 sm:$0xff] (!%p3128_p13)   ;;  %v3612_v38 = vld [vmem:[#allocation7 + $0xa4] ss:$16 sps:$4 sm:$0xff] (!%p3128_p13)   ;;  %v3623_v39 = vld [vmem:[#allocation7 + $0x68] ss:$16 sps:$4 sm:$0xff] (!%p3128_p13)  }
 0x6d4   :  { %2151 = vmatpush1.bf16.msra.mxu0 (!%p3128_p13), %v3596_v28  ;;  %v3626_v40 = vld [vmem:[#allocation7 + $0x8c] ss:$16 sps:$4 sm:$0xff] (!%p3128_p13)   ;;  %v3616_v41 = vld [vmem:[#allocation7 + $0xa0] ss:$16 sps:$4 sm:$0xff] (!%p3128_p13)   ;;  %v3618_v42 = vld [vmem:[#allocation7 + $0xc4] ss:$16 sps:$4 sm:$0xff] (!%p3128_p13)  }
 0x6d5   :  { %2152 = vmatprep.subr.bf16.mxu0 %v3597_v29  ;;  %v3629_v43 = vld [vmem:[#allocation7 + $0x88] ss:$16 sps:$4 sm:$0xff]   ;;  %v3630_v44 = vld [vmem:[#allocation7 + $0xac] ss:$16 sps:$4 sm:$0xff]   ;;  %v3622_v45 = vld [vmem:[#allocation7 + $0xc0] ss:$16 sps:$4 sm:$0xff]  }
 0x6d6   :  { %2192 = vmatpush1.bf16.msra.mxu1 %v3611_v32  ;;  %v3624_v46 = vld [vmem:[#allocation7 + $0xe4] ss:$16 sps:$4 sm:$0xff]   ;;  %v3632_v47 = vld [vmem:[#allocation7 + $0xa8] ss:$16 sps:$4 sm:$0xff]   ;;  %v3633_v48 = vld [vmem:[#allocation7 + $0xcc] ss:$16 sps:$4 sm:$0xff]  }
 0x6d7   :  { %2193 = vmatprep.subr.bf16.mxu1 %v3614_v34  ;;  %v3628_v49 = vld [vmem:[#allocation7 + $0xe0] ss:$16 sps:$4 sm:$0xff]   ;;  %v3635_v51 = vld [vmem:[#allocation7 + $0xc8] ss:$16 sps:$4 sm:$0xff]   ;;  %v3636_v52 = vld [vmem:[#allocation7 + $0xec] ss:$16 sps:$4 sm:$0xff]  }
 0x6d8   :  { %2153 = vmatpush1.bf16.msra.mxu0 %v3599_v31  ;;  %v1949_v50 = vld [vmem:[#allocation3] sm:$0xff]  ;;  %v3638_v54 = vld [vmem:[#allocation7 + $0xe8] ss:$16 sps:$4 sm:$0xff]   ;;  %v1953_v8 = vld [vmem:[#allocation2 + $0xb0] sm:$0xff] }
 0x6d9   :  { %2154 = vmatprep.subr.bf16.mxu0 %v3600_v23  ;;  %v1955_v53 = vpack.c.bf16 %v1949_v50, %v1949_v50  ;;  %v1951_v55 = vld [vmem:[#allocation2 + $0xa0] sm:$0xff]  ;;  %v1952_v56 = vld [vmem:[#allocation2 + $0xa8] sm:$0xff]  ;;  %v1954_v1 = vld [vmem:[#allocation2 + $0xb8] sm:$0xff] }
 0x6da   :  { %2194 = vmatpush1.bf16.msra.mxu1 %v3617_v35  ;;  %v1950_v17 = vld [vmem:[#allocation4] sm:$0xff] }
 0x6db   :  { %2195 = vmatprep.subr.bf16.mxu1 %v3620_v36 }
 0x6dc   :  { %2155 = vmatpush1.bf16.msra.mxu0 %v3604_v25 }
 0x6dd   :  { %2156 = vmatprep.subr.bf16.mxu0 %v3606_v33 }
 0x6de   :  { %2196 = vmatpush1.bf16.msra.mxu1 %v3623_v39 }
 0x6df   :  { %2197 = vmatprep.subr.bf16.mxu1 %v3626_v40 }
 0x6e0   :  { %2157 = vmatpush1.bf16.msra.mxu0 %v3610_v37 }
 0x6e1   :  { %2158 = vmatprep.subr.bf16.mxu0 %v3612_v38 }
 0x6e2   :  { %2198 = vmatpush1.bf16.msra.mxu1 %v3629_v43 }
 0x6e3   :  { %2199 = vmatprep.subr.bf16.mxu1 %v3630_v44 }
 0x6e4   :  { %2159 = vmatpush1.bf16.msra.mxu0 %v3616_v41 }
 0x6e5   :  { %2160 = vmatprep.subr.bf16.mxu0 %v3618_v42 }
 0x6e6   :  { %2200 = vmatpush1.bf16.msra.mxu1 %v3632_v47 }
 0x6e7   :  { %2201 = vmatprep.subr.bf16.mxu1 %v3633_v48 }
 0x6e8   :  { %2161 = vmatpush1.bf16.msra.mxu0 %v3622_v45 }
 0x6e9   :  { %2162 = vmatprep.subr.bf16.mxu0 %v3624_v46 }
 0x6ea   :  { %2202 = vmatpush1.bf16.msra.mxu1 %v3635_v51 }
 0x6eb   :  { %2203 = vmatprep.subr.bf16.mxu1 %v3636_v52 }
 0x6ec   :  { %2163 = vmatpush1.bf16.msra.mxu0 %v3628_v49 }
 0x6ee   :  { %2204 = vmatpush1.bf16.msra.mxu1 %v3638_v54 }
 0x6ef   :  { %2181 = vmatmul.mubr.bf16.vlgmr.msra.gmra.mrb[0].mxu0 %v1955_v53 }
 0x6f1   :  { %2222 = vmatmul.mubr.bf16.vlgmr.msra.gmra.mrb[0].mxu1 %v1955_v53 }
 0x74f   :  { %v2262_v20 = vpop.permute.xlu0 %2261 }
 0x750   :  { %vm2263_vm12 = vcmp.eq.s32.totalorder %v2262_v20, 1 }
 0x7c2   :  { %v2182_v57 = vpop.f32.mrb[0].mxu0 }
 0x7c3   :  { %v2230_v58 = vadd.f32 %v2182_v57, %v1951_v55  ;;  %v2184_v59 = vpop.f32.mrb[1].mxu0 }
 0x7c4   :  { %v2231_v60 = vadd.f32 %v2184_v59, %v1952_v56  ;;  %v2186_v61 = vpop.f32.mrb[2].mxu0  ;;  %v2223_v3 = vpop.f32.mrb[0].mxu1 }
 0x7c5   :  { %v3161_v62 = vmul.f32 -1.442695, %v2230_v58  ;;  %v2187_v63 = vpop.f32.mrb[3].mxu0  ;;  %v2225_v4 = vpop.f32.mrb[1].mxu1  ;;  %v2232_v10 = vadd.f32 %v2223_v3, %v1953_v8 }
 0x7c6   :  { %v3162_v0 = vmul.f32 -1.442695, %v2231_v60  ;;  %v2233_v5 = vadd.f32 %v2225_v4, %v1954_v1  ;;  %v2227_v6 = vpop.f32.mrb[2].mxu1 }
 0x7c7   :  { %3639 = vpow2.f32 %v3161_v62  ;;  %v2228_v7 = vpop.f32.mrb[3].mxu1 }
 0x7c8   :  { %3641 = vpow2.f32 %v3162_v0  ;;  %v3163_v9 = vmul.f32 -1.442695, %v2233_v5 }
 0x7ca   :  { %3643 = vpow2.f32 %v3163_v9 }
 0x7cb   :  { %3645 = vtanh.f32 %v2232_v10 }
 0x7d1   :  { %v3640_v11 = vpop.eup %3639 }
 0x7d2   :  { %v3642_v12 = vpop.eup %3641  ;;  %v2237_v13 = vadd.f32 1.0, %v3640_v11 }
 0x7d3   :  { %v2243_v14 = vadd.f32 1.0, %v3642_v12 }
 0x7d4   :  { %3647 = vrcp.f32 %v2237_v13  ;;  %v3644_v15 = vpop.eup %3643 }
 0x7d5   :  { %3649 = vrcp.f32 %v2243_v14  ;;  %v3646_v16 = vpop.eup %3645  ;;  %v2250_v19 = vadd.f32 1.0, %v3644_v15 }
 0x7d7   :  { %3651 = vrcp.f32 %v2250_v19 }
 0x7de   :  { %v3648_v18 = vpop.eup %3647 }
 0x7df   :  { %v3650_v21 = vpop.eup %3649  ;;  %v2254_v26 = vmul.f32 %v3648_v18, %v3646_v16 }
 0x7e0   :  { %v2253_v27 = vmul.f32 %v3650_v21, %v1950_v17 }
 0x7e1   :  { %v3652_v30 = vpop.eup %3651 }
 0x7e2   :  { %v2255_v28 = vadd.f32 %v2254_v26, %v2253_v27 }
 0x7e4   :  { %3653 = vtanh.f32 %v2255_v28  ;;  %v2266_v29 = vsel %vm2263_vm12, %v2255_v28, %v1950_v17 }
 0x7e5   :  { %2267 = vst [vmem:[#allocation4] sm:$0xff] %v2266_v29 }
 0x7ee   :  { %v3654_v22 = vpop.eup %3653 }
 0x7ef   :  { %v2257_v31 = vmul.f32 %v3654_v22, %v3652_v30 }
 0x7f1   :  { %v2264_v23 = vsel %vm2263_vm12, %v2257_v31, %v1949_v50 }
 0x7f2   :  { %2265 = vst [vmem:[#allocation3] sm:$0xff] %v2264_v23 }
 0x7f3 PF:  { %p3164_p0 = scmp.le.s32.totalorder %s3996_s0, 6 }
 0x7f4   :  { %v3656_v24 = vld [vmem:[#allocation7 + $0x4] ss:$16 sps:$4 sm:$0xff] (!%p3164_p0)   ;;  %vm2581_vm13 = vcmp.gt.s32.totalorder (!%p3164_p0), %v3872_v2, 6  ;;  %v3658_v32 = vld [vmem:[#allocation7] ss:$16 sps:$4 sm:$0xff] (!%p3164_p0)   ;;  %v3820_v25 = vmov (!%p3164_p0), 0  }
 0x7f5   :  { %2271 = sbr.rel (%p3164_p0) target bundleno = 2330 (0x91a), region = 53  ;;  %2503 = vmatprep.mubr.bf16.mxu0 (!%p3164_p0), %v3820_v25  ;;  %2544 = vmatprep.mubr.bf16.mxu1 (!%p3164_p0), %v3820_v25  ;;  %v2582_v33 = vsel (!%p3164_p0), %vm2581_vm13, 1, %v3820_v25  ;;  %v3659_v34 = vld [vmem:[#allocation7 + $0x24] ss:$16 sps:$4 sm:$0xff] (!%p3164_p0)   ;;  %v3661_v35 = vld [vmem:[#allocation7 + $0x20] ss:$16 sps:$4 sm:$0xff] (!%p3164_p0)  }
 0x7f6   :  { %2471 = vmatprep.subr.bf16.mxu0 (!%p3164_p0), %v3656_v24  ;;  %3655 = vset.pattern.permute.xlu0 (!%p3164_p0), %v3820_v25  ;;  %v3662_v36 = vld [vmem:[#allocation7 + $0x44] ss:$16 sps:$4 sm:$0xff] (!%p3164_p0)   ;;  %v3667_v37 = vld [vmem:[#allocation7 + $0xc] ss:$16 sps:$4 sm:$0xff] (!%p3164_p0)   ;;  %v3670_v38 = vld [vmem:[#allocation7 + $0x8] ss:$16 sps:$4 sm:$0xff] (!%p3164_p0)  }
 0x7f7   :  { %2472 = vmatpush1.bf16.msra.mxu0 (!%p3164_p0), %v3658_v32  ;;  %2584 = vperm.xlu0 (!%p3164_p0), %3655, %v2582_v33   ;;  %v3664_v39 = vld [vmem:[#allocation7 + $0x40] ss:$16 sps:$4 sm:$0xff] (!%p3164_p0)   ;;  %v3665_v40 = vld [vmem:[#allocation7 + $0x64] ss:$16 sps:$4 sm:$0xff] (!%p3164_p0)   ;;  %v3673_v41 = vld [vmem:[#allocation7 + $0x2c] ss:$16 sps:$4 sm:$0xff] (!%p3164_p0)  }
 0x7f8   :  { %2473 = vmatprep.subr.bf16.mxu0 (!%p3164_p0), %v3659_v34  ;;  %2512 = vmatprep.subr.bf16.mxu1 (!%p3164_p0), %v3667_v37  ;;  %v3676_v42 = vld [vmem:[#allocation7 + $0x28] ss:$16 sps:$4 sm:$0xff] (!%p3164_p0)   ;;  %v3669_v43 = vld [vmem:[#allocation7 + $0x60] ss:$16 sps:$4 sm:$0xff] (!%p3164_p0)   ;;  %v3671_v44 = vld [vmem:[#allocation7 + $0x84] ss:$16 sps:$4 sm:$0xff] (!%p3164_p0)  }
 0x7f9   :  { %2513 = vmatpush1.bf16.msra.mxu1 (!%p3164_p0), %v3670_v38  ;;  %v3679_v45 = vld [vmem:[#allocation7 + $0x4c] ss:$16 sps:$4 sm:$0xff] (!%p3164_p0)   ;;  %v3682_v46 = vld [vmem:[#allocation7 + $0x48] ss:$16 sps:$4 sm:$0xff] (!%p3164_p0)   ;;  %v3675_v48 = vld [vmem:[#allocation7 + $0x80] ss:$16 sps:$4 sm:$0xff] (!%p3164_p0)  }
 0x7fa   :  { %2514 = vmatprep.subr.bf16.mxu1 (!%p3164_p0), %v3673_v41  ;;  %v3685_v47 = vld [vmem:[#allocation7 + $0x6c] ss:$16 sps:$4 sm:$0xff] (!%p3164_p0)   ;;  %v3677_v49 = vld [vmem:[#allocation7 + $0xa4] ss:$16 sps:$4 sm:$0xff] (!%p3164_p0)   ;;  %v3688_v50 = vld [vmem:[#allocation7 + $0x68] ss:$16 sps:$4 sm:$0xff] (!%p3164_p0)  }
 0x7fb   :  { %2474 = vmatpush1.bf16.msra.mxu0 (!%p3164_p0), %v3661_v35  ;;  %v3691_v51 = vld [vmem:[#allocation7 + $0x8c] ss:$16 sps:$4 sm:$0xff] (!%p3164_p0)   ;;  %v3681_v52 = vld [vmem:[#allocation7 + $0xa0] ss:$16 sps:$4 sm:$0xff] (!%p3164_p0)   ;;  %v3683_v53 = vld [vmem:[#allocation7 + $0xc4] ss:$16 sps:$4 sm:$0xff] (!%p3164_p0)  }
 0x7fc   :  { %2475 = vmatprep.subr.bf16.mxu0 %v3662_v36  ;;  %v3694_v54 = vld [vmem:[#allocation7 + $0x88] ss:$16 sps:$4 sm:$0xff]   ;;  %v3695_v55 = vld [vmem:[#allocation7 + $0xac] ss:$16 sps:$4 sm:$0xff]   ;;  %v3687_v56 = vld [vmem:[#allocation7 + $0xc0] ss:$16 sps:$4 sm:$0xff]  }
 0x7fd   :  { %2515 = vmatpush1.bf16.msra.mxu1 %v3676_v42  ;;  %v3689_v57 = vld [vmem:[#allocation7 + $0xe4] ss:$16 sps:$4 sm:$0xff]   ;;  %v3697_v58 = vld [vmem:[#allocation7 + $0xa8] ss:$16 sps:$4 sm:$0xff]   ;;  %v3698_v59 = vld [vmem:[#allocation7 + $0xcc] ss:$16 sps:$4 sm:$0xff]  }
 0x7fe   :  { %2516 = vmatprep.subr.bf16.mxu1 %v3679_v45  ;;  %v3693_v60 = vld [vmem:[#allocation7 + $0xe0] ss:$16 sps:$4 sm:$0xff]   ;;  %v3700_v62 = vld [vmem:[#allocation7 + $0xc8] ss:$16 sps:$4 sm:$0xff]   ;;  %v3701_v63 = vld [vmem:[#allocation7 + $0xec] ss:$16 sps:$4 sm:$0xff]  }
 0x7ff   :  { %2476 = vmatpush1.bf16.msra.mxu0 %v3664_v39  ;;  %v2272_v61 = vld [vmem:[#allocation3] sm:$0xff]  ;;  %v3703_v1 = vld [vmem:[#allocation7 + $0xe8] ss:$16 sps:$4 sm:$0xff]   ;;  %v2276_v19 = vld [vmem:[#allocation2 + $0xd0] sm:$0xff] }
 0x800   :  { %2477 = vmatprep.subr.bf16.mxu0 %v3665_v40  ;;  %v2278_v0 = vpack.c.bf16 %v2272_v61, %v2272_v61  ;;  %v2274_v3 = vld [vmem:[#allocation2 + $0xc0] sm:$0xff]  ;;  %v2275_v4 = vld [vmem:[#allocation2 + $0xc8] sm:$0xff]  ;;  %v2277_v13 = vld [vmem:[#allocation2 + $0xd8] sm:$0xff] }
 0x801   :  { %2517 = vmatpush1.bf16.msra.mxu1 %v3682_v46  ;;  %v2273_v31 = vld [vmem:[#allocation4] sm:$0xff] }
 0x802   :  { %2518 = vmatprep.subr.bf16.mxu1 %v3685_v47 }
 0x803   :  { %2478 = vmatpush1.bf16.msra.mxu0 %v3669_v43 }
 0x804   :  { %2479 = vmatprep.subr.bf16.mxu0 %v3671_v44 }
 0x805   :  { %2519 = vmatpush1.bf16.msra.mxu1 %v3688_v50 }
 0x806   :  { %2520 = vmatprep.subr.bf16.mxu1 %v3691_v51 }
 0x807   :  { %2480 = vmatpush1.bf16.msra.mxu0 %v3675_v48 }
 0x808   :  { %2481 = vmatprep.subr.bf16.mxu0 %v3677_v49 }
 0x809   :  { %2521 = vmatpush1.bf16.msra.mxu1 %v3694_v54 }
 0x80a   :  { %2522 = vmatprep.subr.bf16.mxu1 %v3695_v55 }
 0x80b   :  { %2482 = vmatpush1.bf16.msra.mxu0 %v3681_v52 }
 0x80c   :  { %2483 = vmatprep.subr.bf16.mxu0 %v3683_v53 }
 0x80d   :  { %2523 = vmatpush1.bf16.msra.mxu1 %v3697_v58 }
 0x80e   :  { %2524 = vmatprep.subr.bf16.mxu1 %v3698_v59 }
 0x80f   :  { %2484 = vmatpush1.bf16.msra.mxu0 %v3687_v56 }
 0x810   :  { %2485 = vmatprep.subr.bf16.mxu0 %v3689_v57 }
 0x811   :  { %2525 = vmatpush1.bf16.msra.mxu1 %v3700_v62 }
 0x812   :  { %2526 = vmatprep.subr.bf16.mxu1 %v3701_v63 }
 0x813   :  { %2486 = vmatpush1.bf16.msra.mxu0 %v3693_v60 }
 0x815   :  { %2527 = vmatpush1.bf16.msra.mxu1 %v3703_v1 }
 0x816   :  { %2504 = vmatmul.mubr.bf16.vlgmr.msra.gmra.mrb[0].mxu0 %v2278_v0 }
 0x818   :  { %2545 = vmatmul.mubr.bf16.vlgmr.msra.gmra.mrb[0].mxu1 %v2278_v0 }
 0x876   :  { %v2585_v32 = vpop.permute.xlu0 %2584 }
 0x877   :  { %vm2586_vm14 = vcmp.eq.s32.totalorder %v2585_v32, 1 }
 0x8e9   :  { %v2505_v5 = vpop.f32.mrb[0].mxu0 }
 0x8ea   :  { %v2553_v6 = vadd.f32 %v2505_v5, %v2274_v3  ;;  %v2507_v7 = vpop.f32.mrb[1].mxu0 }
 0x8eb   :  { %v2554_v8 = vadd.f32 %v2507_v7, %v2275_v4  ;;  %v2509_v9 = vpop.f32.mrb[2].mxu0  ;;  %v2546_v14 = vpop.f32.mrb[0].mxu1 }
 0x8ec   :  { %v3197_v10 = vmul.f32 -1.442695, %v2553_v6  ;;  %v2510_v11 = vpop.f32.mrb[3].mxu0  ;;  %v2548_v15 = vpop.f32.mrb[1].mxu1  ;;  %v2555_v21 = vadd.f32 %v2546_v14, %v2276_v19 }
 0x8ed   :  { %v3198_v12 = vmul.f32 -1.442695, %v2554_v8  ;;  %v2556_v16 = vadd.f32 %v2548_v15, %v2277_v13  ;;  %v2550_v17 = vpop.f32.mrb[2].mxu1 }
 0x8ee   :  { %3704 = vpow2.f32 %v3197_v10  ;;  %v2551_v18 = vpop.f32.mrb[3].mxu1 }
 0x8ef   :  { %3706 = vpow2.f32 %v3198_v12  ;;  %v3199_v20 = vmul.f32 -1.442695, %v2556_v16 }
 0x8f1   :  { %3708 = vpow2.f32 %v3199_v20 }
 0x8f2   :  { %3710 = vtanh.f32 %v2555_v21 }
 0x8f8   :  { %v3705_v26 = vpop.eup %3704 }
 0x8f9   :  { %v3707_v27 = vpop.eup %3706  ;;  %v2560_v28 = vadd.f32 1.0, %v3705_v26 }
 0x8fa   :  { %v2566_v29 = vadd.f32 1.0, %v3707_v27 }
 0x8fb   :  { %3712 = vrcp.f32 %v2560_v28  ;;  %v3709_v30 = vpop.eup %3708 }
 0x8fc   :  { %3714 = vrcp.f32 %v2566_v29  ;;  %v3711_v22 = vpop.eup %3710  ;;  %v2573_v24 = vadd.f32 1.0, %v3709_v30 }
 0x8fe   :  { %3716 = vrcp.f32 %v2573_v24 }
 0x905   :  { %v3713_v23 = vpop.eup %3712 }
 0x906   :  { %v3715_v25 = vpop.eup %3714  ;;  %v2577_v33 = vmul.f32 %v3713_v23, %v3711_v22 }
 0x907   :  { %v2576_v34 = vmul.f32 %v3715_v25, %v2273_v31 }
 0x908   :  { %v3717_v37 = vpop.eup %3716 }
 0x909   :  { %v2578_v35 = vadd.f32 %v2577_v33, %v2576_v34 }
 0x90b   :  { %3718 = vtanh.f32 %v2578_v35  ;;  %v2589_v36 = vsel %vm2586_vm14, %v2578_v35, %v2273_v31 }
 0x90c   :  { %2590 = vst [vmem:[#allocation4] sm:$0xff] %v2589_v36 }
 0x915   :  { %v3719_v38 = vpop.eup %3718 }
 0x916   :  { %v2580_v39 = vmul.f32 %v3719_v38, %v3717_v37 }
 0x918   :  { %v2587_v40 = vsel %vm2586_vm14, %v2580_v39, %v2272_v61 }
 0x919   :  { %2588 = vst [vmem:[#allocation3] sm:$0xff] %v2587_v40 }
 0x91a PF:  { %p3200_p1 = scmp.le.s32.totalorder %s3996_s0, 7 }
 0x91b   :  { %v3721_v41 = vld [vmem:[#allocation7 + $0x4] ss:$16 sps:$4 sm:$0xff] (!%p3200_p1)   ;;  %vm2904_vm15 = vcmp.gt.s32.totalorder (!%p3200_p1), %v3872_v2, 7  ;;  %v3723_v42 = vld [vmem:[#allocation7] ss:$16 sps:$4 sm:$0xff] (!%p3200_p1)   ;;  %v3821_v43 = vmov (!%p3200_p1), 0  }
 0x91c   :  { %2594 = sbr.rel (%p3200_p1) target bundleno = 2625 (0xa41), region = 57  ;;  %2826 = vmatprep.mubr.bf16.mxu0 (!%p3200_p1), %v3821_v43  ;;  %2867 = vmatprep.mubr.bf16.mxu1 (!%p3200_p1), %v3821_v43  ;;  %v2905_v44 = vsel (!%p3200_p1), %vm2904_vm15, 1, %v3821_v43  ;;  %v3724_v45 = vld [vmem:[#allocation7 + $0x24] ss:$16 sps:$4 sm:$0xff] (!%p3200_p1)   ;;  %v3726_v46 = vld [vmem:[#allocation7 + $0x20] ss:$16 sps:$4 sm:$0xff] (!%p3200_p1)  }
 0x91d   :  { %2794 = vmatprep.subr.bf16.mxu0 (!%p3200_p1), %v3721_v41  ;;  %3720 = vset.pattern.permute.xlu0 (!%p3200_p1), %v3821_v43  ;;  %v3727_v47 = vld [vmem:[#allocation7 + $0x44] ss:$16 sps:$4 sm:$0xff] (!%p3200_p1)   ;;  %v3732_v48 = vld [vmem:[#allocation7 + $0xc] ss:$16 sps:$4 sm:$0xff] (!%p3200_p1)   ;;  %v3735_v49 = vld [vmem:[#allocation7 + $0x8] ss:$16 sps:$4 sm:$0xff] (!%p3200_p1)  }
 0x91e   :  { %2795 = vmatpush1.bf16.msra.mxu0 (!%p3200_p1), %v3723_v42  ;;  %2907 = vperm.xlu0 (!%p3200_p1), %3720, %v2905_v44   ;;  %v3729_v50 = vld [vmem:[#allocation7 + $0x40] ss:$16 sps:$4 sm:$0xff] (!%p3200_p1)   ;;  %v3730_v2 = vld [vmem:[#allocation7 + $0x64] ss:$16 sps:$4 sm:$0xff] (!%p3200_p1)   ;;  %v3738_v51 = vld [vmem:[#allocation7 + $0x2c] ss:$16 sps:$4 sm:$0xff] (!%p3200_p1)  }
 0x91f   :  { %2796 = vmatprep.subr.bf16.mxu0 (!%p3200_p1), %v3724_v45  ;;  %2835 = vmatprep.subr.bf16.mxu1 (!%p3200_p1), %v3732_v48  ;;  %v3741_v52 = vld [vmem:[#allocation7 + $0x28] ss:$16 sps:$4 sm:$0xff] (!%p3200_p1)   ;;  %v3734_v53 = vld [vmem:[#allocation7 + $0x60] ss:$16 sps:$4 sm:$0xff] (!%p3200_p1)   ;;  %v3736_v54 = vld [vmem:[#allocation7 + $0x84] ss:$16 sps:$4 sm:$0xff] (!%p3200_p1)  }
 0x920   :  { %2836 = vmatpush1.bf16.msra.mxu1 (!%p3200_p1), %v3735_v49  ;;  %v3744_v55 = vld [vmem:[#allocation7 + $0x4c] ss:$16 sps:$4 sm:$0xff] (!%p3200_p1)   ;;  %v3747_v56 = vld [vmem:[#allocation7 + $0x48] ss:$16 sps:$4 sm:$0xff] (!%p3200_p1)   ;;  %v3740_v58 = vld [vmem:[#allocation7 + $0x80] ss:$16 sps:$4 sm:$0xff] (!%p3200_p1)  }
 0x921   :  { %2837 = vmatprep.subr.bf16.mxu1 (!%p3200_p1), %v3738_v51  ;;  %v3750_v57 = vld [vmem:[#allocation7 + $0x6c] ss:$16 sps:$4 sm:$0xff] (!%p3200_p1)   ;;  %v3742_v59 = vld [vmem:[#allocation7 + $0xa4] ss:$16 sps:$4 sm:$0xff] (!%p3200_p1)   ;;  %v3753_v60 = vld [vmem:[#allocation7 + $0x68] ss:$16 sps:$4 sm:$0xff] (!%p3200_p1)  }
 0x922   :  { %2797 = vmatpush1.bf16.msra.mxu0 (!%p3200_p1), %v3726_v46  ;;  %v3756_v61 = vld [vmem:[#allocation7 + $0x8c] ss:$16 sps:$4 sm:$0xff] (!%p3200_p1)   ;;  %v3746_v62 = vld [vmem:[#allocation7 + $0xa0] ss:$16 sps:$4 sm:$0xff] (!%p3200_p1)   ;;  %v3748_v63 = vld [vmem:[#allocation7 + $0xc4] ss:$16 sps:$4 sm:$0xff] (!%p3200_p1)  }
 0x923   :  { %2798 = vmatprep.subr.bf16.mxu0 %v3727_v47  ;;  %v3759_v0 = vld [vmem:[#allocation7 + $0x88] ss:$16 sps:$4 sm:$0xff]   ;;  %v3760_v1 = vld [vmem:[#allocation7 + $0xac] ss:$16 sps:$4 sm:$0xff]   ;;  %v3752_v3 = vld [vmem:[#allocation7 + $0xc0] ss:$16 sps:$4 sm:$0xff]  }
 0x924   :  { %2838 = vmatpush1.bf16.msra.mxu1 %v3741_v52  ;;  %v3754_v4 = vld [vmem:[#allocation7 + $0xe4] ss:$16 sps:$4 sm:$0xff]   ;;  %v3762_v5 = vld [vmem:[#allocation7 + $0xa8] ss:$16 sps:$4 sm:$0xff]   ;;  %v3763_v6 = vld [vmem:[#allocation7 + $0xcc] ss:$16 sps:$4 sm:$0xff]  }
 0x925   :  { %2839 = vmatprep.subr.bf16.mxu1 %v3744_v55  ;;  %v3758_v7 = vld [vmem:[#allocation7 + $0xe0] ss:$16 sps:$4 sm:$0xff]   ;;  %v3765_v9 = vld [vmem:[#allocation7 + $0xc8] ss:$16 sps:$4 sm:$0xff]   ;;  %v3766_v10 = vld [vmem:[#allocation7 + $0xec] ss:$16 sps:$4 sm:$0xff]  }
 0x926   :  { %2799 = vmatpush1.bf16.msra.mxu0 %v3729_v50  ;;  %v2595_v8 = vld [vmem:[#allocation3] sm:$0xff]  ;;  %v3768_v12 = vld [vmem:[#allocation7 + $0xe8] ss:$16 sps:$4 sm:$0xff]   ;;  %v2599_v23 = vld [vmem:[#allocation2 + $0xf0] sm:$0xff] }
 0x927   :  { %2800 = vmatprep.subr.bf16.mxu0 %v3730_v2  ;;  %v2601_v11 = vpack.c.bf16 %v2595_v8, %v2595_v8  ;;  %v2597_v13 = vld [vmem:[#allocation2 + $0xe0] sm:$0xff]  ;;  %v2598_v14 = vld [vmem:[#allocation2 + $0xe8] sm:$0xff]  ;;  %v2600_v27 = vld [vmem:[#allocation2 + $0xf8] sm:$0xff] }
 0x928   :  { %2840 = vmatpush1.bf16.msra.mxu1 %v3747_v56  ;;  %v2596_v38 = vld [vmem:[#allocation4] sm:$0xff] }
 0x929   :  { %2841 = vmatprep.subr.bf16.mxu1 %v3750_v57 }
 0x92a   :  { %2801 = vmatpush1.bf16.msra.mxu0 %v3734_v53 }
 0x92b   :  { %2802 = vmatprep.subr.bf16.mxu0 %v3736_v54 }
 0x92c   :  { %2842 = vmatpush1.bf16.msra.mxu1 %v3753_v60 }
 0x92d   :  { %2843 = vmatprep.subr.bf16.mxu1 %v3756_v61 }
 0x92e   :  { %2803 = vmatpush1.bf16.msra.mxu0 %v3740_v58 }
 0x92f   :  { %2804 = vmatprep.subr.bf16.mxu0 %v3742_v59 }
 0x930   :  { %2844 = vmatpush1.bf16.msra.mxu1 %v3759_v0 }
 0x931   :  { %2845 = vmatprep.subr.bf16.mxu1 %v3760_v1 }
 0x932   :  { %2805 = vmatpush1.bf16.msra.mxu0 %v3746_v62 }
 0x933   :  { %2806 = vmatprep.subr.bf16.mxu0 %v3748_v63 }
 0x934   :  { %2846 = vmatpush1.bf16.msra.mxu1 %v3762_v5 }
 0x935   :  { %2847 = vmatprep.subr.bf16.mxu1 %v3763_v6 }
 0x936   :  { %2807 = vmatpush1.bf16.msra.mxu0 %v3752_v3 }
 0x937   :  { %2808 = vmatprep.subr.bf16.mxu0 %v3754_v4 }
 0x938   :  { %2848 = vmatpush1.bf16.msra.mxu1 %v3765_v9 }
 0x939   :  { %2849 = vmatprep.subr.bf16.mxu1 %v3766_v10 }
 0x93a   :  { %2809 = vmatpush1.bf16.msra.mxu0 %v3758_v7 }
 0x93c   :  { %2850 = vmatpush1.bf16.msra.mxu1 %v3768_v12 }
 0x93d   :  { %2827 = vmatmul.mubr.bf16.vlgmr.msra.gmra.mrb[0].mxu0 %v2601_v11 }
 0x93f   :  { %2868 = vmatmul.mubr.bf16.vlgmr.msra.gmra.mrb[0].mxu1 %v2601_v11 }
 0x99d   :  { %v2908_v41 = vpop.permute.xlu0 %2907 }
 0x99e   :  { %vm2909_vm0 = vcmp.eq.s32.totalorder %v2908_v41, 1 }
 0xa10   :  { %v2828_v15 = vpop.f32.mrb[0].mxu0 }
 0xa11   :  { %v2876_v16 = vadd.f32 %v2828_v15, %v2597_v13  ;;  %v2830_v17 = vpop.f32.mrb[1].mxu0 }
 0xa12   :  { %v2877_v18 = vadd.f32 %v2830_v17, %v2598_v14  ;;  %v2832_v19 = vpop.f32.mrb[2].mxu0  ;;  %v2869_v28 = vpop.f32.mrb[0].mxu1 }
 0xa13   :  { %v3233_v20 = vmul.f32 -1.442695, %v2876_v16  ;;  %v2833_v21 = vpop.f32.mrb[3].mxu0  ;;  %v2871_v29 = vpop.f32.mrb[1].mxu1  ;;  %v2878_v32 = vadd.f32 %v2869_v28, %v2599_v23 }
 0xa14   :  { %v3234_v26 = vmul.f32 -1.442695, %v2877_v18  ;;  %v2879_v30 = vadd.f32 %v2871_v29, %v2600_v27  ;;  %v2873_v22 = vpop.f32.mrb[2].mxu1 }
 0xa15   :  { %3769 = vpow2.f32 %v3233_v20  ;;  %v2874_v31 = vpop.f32.mrb[3].mxu1 }
 0xa16   :  { %3771 = vpow2.f32 %v3234_v26  ;;  %v3235_v24 = vmul.f32 -1.442695, %v2879_v30 }
 0xa18   :  { %3773 = vpow2.f32 %v3235_v24 }
 0xa19   :  { %3775 = vtanh.f32 %v2878_v32 }
 0xa1f   :  { %v3770_v25 = vpop.eup %3769 }
 0xa20   :  { %v3772_v33 = vpop.eup %3771  ;;  %v2883_v34 = vadd.f32 1.0, %v3770_v25 }
 0xa21   :  { %v2889_v35 = vadd.f32 1.0, %v3772_v33 }
 0xa22   :  { %3777 = vrcp.f32 %v2883_v34  ;;  %v3774_v36 = vpop.eup %3773 }
 0xa23   :  { %3779 = vrcp.f32 %v2889_v35  ;;  %v3776_v37 = vpop.eup %3775  ;;  %v2896_v40 = vadd.f32 1.0, %v3774_v36 }
 0xa25   :  { %3781 = vrcp.f32 %v2896_v40 }
 0xa2c   :  { %v3778_v39 = vpop.eup %3777 }
 0xa2d   :  { %v3780_v42 = vpop.eup %3779  ;;  %v2900_v43 = vmul.f32 %v3778_v39, %v3776_v37 }
 0xa2e   :  { %v2899_v44 = vmul.f32 %v3780_v42, %v2596_v38 }
 0xa2f   :  { %v3782_v47 = vpop.eup %3781 }
 0xa30   :  { %v2901_v45 = vadd.f32 %v2900_v43, %v2899_v44 }
 0xa32   :  { %3783 = vtanh.f32 %v2901_v45  ;;  %v2912_v46 = vsel %vm2909_vm0, %v2901_v45, %v2596_v38 }
 0xa33   :  { %2913 = vst [vmem:[#allocation4] sm:$0xff] %v2912_v46 }
 0xa3c   :  { %v3784_v48 = vpop.eup %3783 }
 0xa3d   :  { %v2903_v49 = vmul.f32 %v3784_v48, %v3782_v47 }
 0xa3f   :  { %v2910_v50 = vsel %vm2909_vm0, %v2903_v49, %v2595_v8 }
 0xa40   :  { %2911 = vst [vmem:[#allocation3] sm:$0xff] %v2910_v50 }
 0xa41 PF:  { %vm2921_vm1 = vcmask 7168  }
 0xa47   :  { %v2914_v2 = vld [vmem:[#allocation3] sm:$0xff] }
 0xa48   :  { %v2915_v51 = vadd.f32 1.0, %v2914_v2 }
 0xa4a   :  { %v2916_v52 = vmax.f32 %v2915_v51, 0.0 }
 0xa4c   :  { %2917 = vadd.xlane.f32.xlu0 %v2916_v52 }
 0xad9   :  { %v2918_v53 = vpop.xlane.xlu0 %2917 }
 0xada   :  { %v2920_v54 = vmul.f32 0.0078125, %v2918_v53 }
 0xadc   :  { %2922 = vst.msk [vmem:[%s4002_s6] sm:$0xff] %vm2921_vm1, %v2920_v54 }
 0xadd   :  { %2927 = vsyncpa [#allocation8], 1 }

</bundles_post_ra>
